<compile_context>
chip_gen: v7x
topology: tpu7x:2x2x1
jax: 0.10.0
libtpu: 0.0.40
codegen_flags: <defaults>
</compile_context>

<pallas_src>
import functools

import jax
import jax.numpy as jnp
from jax import lax
from jax.experimental import pallas as pl
from jax.experimental.pallas import tpu as pltpu

_SUBLANES = 8  # f32 sublane count


# ---------------------------------------------------------------------------
# Fused kernel: skewed-wavefront 2-layer LSTM + Linear head + log_softmax.
# Grid axis = time chunks ("arbitrary"); recurrent state is carried across
# chunks in VMEM scratch and across steps in vregs (fori_loop carry).
# ---------------------------------------------------------------------------
def _fused_lstm_kernel(x_ref, wih0_ref, b0_ref, wrec_ref, b1_ref,
                       wlin_ref, blin_ref,
                       scores_ref, hn_ref, cn_ref,
                       gx_sc, state_sc, *, unroll):
    B = state_sc.shape[1]          # padded batch (multiple of 8)
    H = state_sc.shape[2]
    H4 = 4 * H
    Tc = gx_sc.shape[0] // B       # time steps in this chunk

    chunk = pl.program_id(0)
    last_chunk = pl.num_programs(0) - 1

    # ---- init carried recurrent state on the first chunk ----
    @pl.when(chunk == 0)
    def _():
        state_sc[...] = jnp.zeros_like(state_sc)

    # ---- hoisted layer-0 input projection for this chunk ----
    # One lane-dense (Tc*B, D) @ (D, 4H) bf16 MXU matmul, f32 accumulation.
    gx_sc[...] = (
        jnp.dot(x_ref[...].astype(jnp.bfloat16), wih0_ref[...],
                preferred_element_type=jnp.float32)
        + b0_ref[...])

    w_rec = wrec_ref[...]          # (2H, 8H) bf16: [[Whh0 | Wih1], [0 | Whh1]]
    b1 = b1_ref[...]               # (1, 4H) f32

    def cell(gates, c_prev):
        # g-gate columns were pre-scaled by 2 on the host, so a single sigmoid
        # pass over the (B, 4H) slab yields i, f, o and tanh(g) = 2*sig(2g)-1.
        sg = jax.nn.sigmoid(gates)
        i_g = sg[:, 0 * H:1 * H]
        f_g = sg[:, 1 * H:2 * H]
        g_g = 2.0 * sg[:, 2 * H:3 * H] - 1.0
        o_g = sg[:, 3 * H:4 * H]
        c_new = f_g * c_prev + i_g * g_g
        h_new = o_g * jnp.tanh(c_new)
        return h_new, c_new

    def rec_gates(h0, h1):
        # One (B, 2H) @ (2H, 8H) bf16 matmul producing BOTH layers' recurrent
        # gate contributions: cols [0:4H] -> layer-0 step s, [4H:8H] -> layer-1
        # step s-1 (independent of each other: skewed wavefront).
        hh = jnp.concatenate([h0, h1], axis=1).astype(jnp.bfloat16)
        return jnp.dot(hh, w_rec, preferred_element_type=jnp.float32)

    def step(t, carry):
        # carry = (h0_{s-1}, c0_{s-1}, h1_{s-2}, c1_{s-2}) for global step s.
        h0, c0, h1, c1 = carry
        gall = rec_gates(h0, h1)                       # (B, 8H) f32
        row = pl.multiple_of(t * B, B)
        gates0 = gx_sc[pl.ds(row, B), :] + gall[:, :H4]
        h0n, c0n = cell(gates0, c0)                    # layer-0, step s
        gates1 = gall[:, H4:] + b1
        h1n, c1n = cell(gates1, c1)                    # layer-1, step s-1
        # Layer-1 "step -1" does not exist: keep zeros at the very first step.
        s = chunk * Tc + t
        h1n = jnp.where(s >= 1, h1n, h1)
        c1n = jnp.where(s >= 1, c1n, c1)
        return h0n, c0n, h1n, c1n

    init = (state_sc[0], state_sc[1], state_sc[2], state_sc[3])
    h0, c0, h1, c1 = lax.fori_loop(0, Tc, step, init, unroll=unroll)

    # Carry recurrent state into the next chunk.
    state_sc[0] = h0
    state_sc[1] = c0
    state_sc[2] = h1
    state_sc[3] = c1

    # ---- last chunk: finish trailing layer-1 step, Linear + log_softmax ----
    @pl.when(chunk == last_chunk)
    def _():
        gates1 = rec_gates(h0, h1)[:, H4:] + b1
        h1f, c1f = cell(gates1, c1)                    # layer-1, step T-1
        logits = (jnp.dot(h1f, wlin_ref[...],
                          preferred_element_type=jnp.float32) + blin_ref[...])
        m = jnp.max(logits, axis=-1, keepdims=True)
        shifted = logits - m
        lse = jnp.log(jnp.sum(jnp.exp(shifted), axis=-1, keepdims=True))
        scores_ref[...] = (shifted - lse).astype(scores_ref.dtype)
        hn_ref[0] = h0.astype(hn_ref.dtype)
        cn_ref[0] = c0.astype(cn_ref.dtype)
        hn_ref[1] = h1f.astype(hn_ref.dtype)
        cn_ref[1] = c1f.astype(cn_ref.dtype)


def _largest_divisor_leq(n, cap):
    d = min(n, cap)
    while n % d:
        d -= 1
    return d


def lstm_forward_fused(x, fused):
    """x: (T, B, D) f32. fused: dict from prepare_fused_params.
    Returns (scores (B,O), h_n (2,B,H), c_n (2,B,H))."""
    T, B, D = x.shape
    H, O = fused["lin_w"].shape
    H4 = 4 * H

    # Pad batch to a full f32 sublane tile; pad rows are zero and sliced off.
    B_pad = -(-B // _SUBLANES) * _SUBLANES
    if B_pad != B:
        x = jnp.pad(x, ((0, 0), (0, B_pad - B), (0, 0)))
    x_flat = x.reshape(T * B_pad, D)                  # lane-dense 2-D layout

    # Time-chunking bounds the per-chunk gate scratch and lets the next x
    # chunk DMA overlap with the recurrence on the current one.
    Tc = _largest_divisor_leq(T, 128)
    n_chunks = T // Tc
    unroll = 8 if Tc % 8 == 0 else (4 if Tc % 4 == 0 else 1)

    # Explicit VMEM budget (double-buffered x chunk + scratch + weights + outs).
    need = (2 * Tc * B_pad * D * 4                 # x chunk (double-buffered)
            + Tc * B_pad * H4 * 4                  # gx scratch
            + 4 * B_pad * H * 4                    # carried state scratch
            + (D * H4 + 2 * H * 8 * H) * 2         # bf16 weights
            + (2 * H4 + H * O + O) * 4             # f32 biases + head
            + 2 * (B_pad * O + 4 * B_pad * H) * 4) # outputs
    vmem_limit = int(min(max(2 * need, 16 * 1024 * 1024), 96 * 1024 * 1024))

    kernel = functools.partial(_fused_lstm_kernel, unroll=unroll)

    out_shapes = (
        jax.ShapeDtypeStruct((B_pad, O), jnp.float32),      # log-softmax scores
        jax.ShapeDtypeStruct((2, B_pad, H), jnp.float32),   # h_n
        jax.ShapeDtypeStruct((2, B_pad, H), jnp.float32),   # c_n
    )
    scores, h_n, c_n = pl.pallas_call(
        kernel,
        out_shape=out_shapes,
        grid_spec=pltpu.PrefetchScalarGridSpec(
            num_scalar_prefetch=0,
            grid=(n_chunks,),
            in_specs=[
                pl.BlockSpec((Tc * B_pad, D), lambda c: (c, 0)),   # x chunk
                pl.BlockSpec((D, H4), lambda c: (0, 0)),           # W_ih0 bf16
                pl.BlockSpec((1, H4), lambda c: (0, 0)),           # b0
                pl.BlockSpec((2 * H, 8 * H), lambda c: (0, 0)),    # W_rec bf16
                pl.BlockSpec((1, H4), lambda c: (0, 0)),           # b1
                pl.BlockSpec((H, O), lambda c: (0, 0)),            # lin_w
                pl.BlockSpec((1, O), lambda c: (0, 0)),            # lin_b
            ],
            out_specs=[
                pl.BlockSpec((B_pad, O), lambda c: (0, 0)),
                pl.BlockSpec((2, B_pad, H), lambda c: (0, 0, 0)),
                pl.BlockSpec((2, B_pad, H), lambda c: (0, 0, 0)),
            ],
            scratch_shapes=[
                pltpu.VMEM((Tc * B_pad, H4), jnp.float32),  # hoisted layer-0 gates
                pltpu.VMEM((4, B_pad, H), jnp.float32),     # carried h0,c0,h1,c1
            ],
        ),
        compiler_params=pltpu.CompilerParams(
            dimension_semantics=("arbitrary",),
            vmem_limit_bytes=vmem_limit,
        ),
    )(x_flat, fused["w_ih0"], fused["b0"], fused["w_rec"], fused["b1"],
      fused["lin_w"], fused["lin_b"])

    return scores[:B], h_n[:, :B], c_n[:, :B]


# ---------------------------------------------------------------------------
# Full model forward (matches PyTorch LSTM.forward with hidden=None).
# ---------------------------------------------------------------------------
@jax.jit
def lstm_model_forward(x, fused):
    scores, h_n, c_n = lstm_forward_fused(x, fused)
    return scores, (h_n, c_n)


# ---------------------------------------------------------------------------
# Parameters. init_params produces "standard" pre-transposed weights
# (w_ih: (D_in,4H), w_hh: (H,4H), bias=b_ih+b_hh: (1,4H), gate order [i,f,g,o],
# lin_w: (H,O)).  prepare_fused_params builds the kernel-side tensors:
# g-gate columns pre-scaled by 2 (tanh-from-sigmoid trick), the combined
# (2H,8H) recurrent weight for the wavefront matmul, and bf16 MXU operands.
# ---------------------------------------------------------------------------
def init_params(key, input_dim, hidden_dim, output_dim, num_layers):
    assert num_layers == 2, "fused kernel is specialized to num_layers=2"
    params = {"lstm_layers": []}
    bound = 1.0 / float(jnp.sqrt(hidden_dim))
    for layer in range(num_layers):
        d_in = input_dim if layer == 0 else hidden_dim
        key, k1, k2, k3, k4 = jax.random.split(key, 5)
        w_ih = jax.random.uniform(k1, (d_in, 4 * hidden_dim),
                                  jnp.float32, -bound, bound)
        w_hh = jax.random.uniform(k2, (hidden_dim, 4 * hidden_dim),
                                  jnp.float32, -bound, bound)
        b_ih = jax.random.uniform(k3, (4 * hidden_dim,),
                                  jnp.float32, -bound, bound)
        b_hh = jax.random.uniform(k4, (4 * hidden_dim,),
                                  jnp.float32, -bound, bound)
        bias = (b_ih + b_hh).reshape(1, 4 * hidden_dim)
        params["lstm_layers"].append((w_ih, w_hh, bias))
    key, k5, k6 = jax.random.split(key, 3)
    params["lin_w"] = jax.random.uniform(k5, (hidden_dim, output_dim),
                                         jnp.float32, -bound, bound)
    params["lin_b"] = jax.random.uniform(k6, (1, output_dim),
                                         jnp.float32, -bound, bound)
    return params


def _scale_g_columns(w, hidden_dim):
    """Scale the g-gate columns ([2H:3H] of the 4H axis) by 2 so the kernel
    can recover tanh(g) = 2*sigmoid(2g) - 1 from a single sigmoid pass."""
    return w.at[..., 2 * hidden_dim:3 * hidden_dim].multiply(2.0)


def prepare_fused_params(params):
    (w_ih0, w_hh0, b0), (w_ih1, w_hh1, b1) = params["lstm_layers"]
    H = w_hh0.shape[0]
    w_ih0 = _scale_g_columns(w_ih0, H)
    w_hh0 = _scale_g_columns(w_hh0, H)
    w_ih1 = _scale_g_columns(w_ih1, H)
    w_hh1 = _scale_g_columns(w_hh1, H)
    b0 = _scale_g_columns(b0, H)
    b1 = _scale_g_columns(b1, H)
    # Combined recurrent weight (2H, 8H):
    #   [h0 | h1] @ w_rec = [ h0 @ W_hh0  |  h0 @ W_ih1 + h1 @ W_hh1 ]
    w_rec = jnp.concatenate(
        [jnp.concatenate([w_hh0, w_ih1], axis=1),
         jnp.concatenate([jnp.zeros_like(w_hh1), w_hh1], axis=1)], axis=0)
    return {
        "w_ih0": w_ih0.astype(jnp.bfloat16),
        "b0": b0,
        "w_rec": w_rec.astype(jnp.bfloat16),
        "b1": b1,
        "lin_w": params["lin_w"],
        "lin_b": params["lin_b"],
    }


# ---------------------------------------------------------------------------
# Pure-JAX reference (correctness check only) — uses the unscaled f32 weights.
# ---------------------------------------------------------------------------
def reference_forward(x, params):
    layer_in = x
    h_ns, c_ns = [], []
    for (w_ih, w_hh, bias) in params["lstm_layers"]:
        T, B, _ = layer_in.shape
        H = w_hh.shape[0]
        h = jnp.zeros((B, H), jnp.float32)
        c = jnp.zeros((B, H), jnp.float32)
        outs = []
        for t in range(T):
            gates = layer_in[t] @ w_ih + h @ w_hh + bias
            i = jax.nn.sigmoid(gates[:, 0 * H:1 * H])
            f = jax.nn.sigmoid(gates[:, 1 * H:2 * H])
            g = jnp.tanh(gates[:, 2 * H:3 * H])
            o = jax.nn.sigmoid(gates[:, 3 * H:4 * H])
            c = f * c + i * g
            h = o * jnp.tanh(c)
            outs.append(h)
        layer_in = jnp.stack(outs, axis=0)
        h_ns.append(h)
        c_ns.append(c)
    logits = layer_in[-1] @ params["lin_w"] + params["lin_b"]
    scores = jax.nn.log_softmax(logits, axis=1)
    return scores, (jnp.stack(h_ns, 0), jnp.stack(c_ns, 0))


if __name__ == "__main__":
    SEQ, BATCH, INPUT_DIM, HIDDEN_DIM, OUTPUT_DIM, NUM_LAYERS = 8, 4, 16, 32, 8, 2

    key = jax.random.PRNGKey(0)
    key, pkey, xkey = jax.random.split(key, 3)
    params = init_params(pkey, INPUT_DIM, HIDDEN_DIM, OUTPUT_DIM, NUM_LAYERS)
    fused = prepare_fused_params(params)
    x = jax.random.normal(xkey, (SEQ, BATCH, INPUT_DIM), jnp.float32)

    scores, (h_n, c_n) = lstm_model_forward(x, fused)
    jax.block_until_ready((scores, h_n, c_n))

    ref_scores, (ref_h, ref_c) = reference_forward(x, params)
    assert scores.shape == (BATCH, OUTPUT_DIM)
    assert h_n.shape == (NUM_LAYERS, BATCH, HIDDEN_DIM)
    assert c_n.shape == (NUM_LAYERS, BATCH, HIDDEN_DIM)
    # bf16 MXU operands with f32 accumulation: tolerance relaxed to ~1e-2.
    assert jnp.allclose(scores, ref_scores, atol=2e-2), "scores mismatch"
    assert jnp.allclose(h_n, ref_h, atol=2e-2), "h_n mismatch"
    assert jnp.allclose(c_n, ref_c, atol=2e-2), "c_n mismatch"

    print("KERNEL_OK")
</pallas_src>

<mosaic_0001>
module attributes {stable_mosaic.version = 11 : i64} {
  func.func @_fused_lstm_kernel(%arg0: i32, %arg1: memref<64x16xf32, #tpu.memory_space<vmem>>, %arg2: memref<16x128xbf16, #tpu.memory_space<vmem>>, %arg3: memref<1x128xf32, #tpu.memory_space<vmem>>, %arg4: memref<64x256xbf16, #tpu.memory_space<vmem>>, %arg5: memref<1x128xf32, #tpu.memory_space<vmem>>, %arg6: memref<32x8xf32, #tpu.memory_space<vmem>>, %arg7: memref<1x8xf32, #tpu.memory_space<vmem>>, %arg8: memref<8x8xf32, #tpu.memory_space<vmem>>, %arg9: memref<2x8x32xf32, #tpu.memory_space<vmem>>, %arg10: memref<2x8x32xf32, #tpu.memory_space<vmem>>, %arg11: memref<64x128xf32, #tpu.memory_space<vmem>>, %arg12: memref<4x8x32xf32, #tpu.memory_space<vmem>>) attributes {dimension_semantics = [#tpu.dimension_semantics<arbitrary>], iteration_bounds = array<i64: 1>, scalar_prefetch = 0 : i64, scratch_operands = 2 : i64, tpu.core_type = #tpu.core_type<tc>, window_params = [{transform_indices = @transform_0, window_bounds = array<i64: 64, 16>}, {pipeline_mode = #tpu.pipeline_mode<synchronous>, transform_indices = @transform_1, window_bounds = array<i64: 16, 128>}, {pipeline_mode = #tpu.pipeline_mode<synchronous>, transform_indices = @transform_2, window_bounds = array<i64: 1, 128>}, {pipeline_mode = #tpu.pipeline_mode<synchronous>, transform_indices = @transform_3, window_bounds = array<i64: 64, 256>}, {pipeline_mode = #tpu.pipeline_mode<synchronous>, transform_indices = @transform_4, window_bounds = array<i64: 1, 128>}, {pipeline_mode = #tpu.pipeline_mode<synchronous>, transform_indices = @transform_5, window_bounds = array<i64: 32, 8>}, {pipeline_mode = #tpu.pipeline_mode<synchronous>, transform_indices = @transform_6, window_bounds = array<i64: 1, 8>}, {pipeline_mode = #tpu.pipeline_mode<synchronous>, transform_indices = @transform_7, window_bounds = array<i64: 8, 8>}, {pipeline_mode = #tpu.pipeline_mode<synchronous>, transform_indices = @transform_8, window_bounds = array<i64: 2, 8, 32>}, {pipeline_mode = #tpu.pipeline_mode<synchronous>, transform_indices = @transform_9, window_bounds = array<i64: 2, 8, 32>}]} {
    %c0_i32 = arith.constant 0 : i32
    %0 = arith.cmpi eq, %arg0, %c0_i32 : i32
    %1 = arith.extui %0 : i1 to i32
    %c0_i32_0 = arith.constant 0 : i32
    %2 = arith.cmpi ne, %1, %c0_i32_0 : i32
    scf.if %2 {
      %cst_132 = arith.constant 0.000000e+00 : f32
      %468 = vector.broadcast %cst_132 : f32 to vector<4x8x32xf32>
      %c0_133 = arith.constant 0 : index
      %c0_134 = arith.constant 0 : index
      %c0_135 = arith.constant 0 : index
      %469 = vector.load %arg12[%c0_133, %c0_134, %c0_135] : memref<4x8x32xf32, #tpu.memory_space<vmem>>, vector<4x8x32xf32>
      tpu.vector_store %arg12[%c0_133, %c0_134, %c0_135], %468 {strides = array<i32>} : memref<4x8x32xf32, #tpu.memory_space<vmem>>, vector<4x8x32xf32>,
    } else {
    }
    %c0 = arith.constant 0 : index
    %c0_1 = arith.constant 0 : index
    %3 = vector.load %arg1[%c0, %c0_1] : memref<64x16xf32, #tpu.memory_space<vmem>>, vector<64x16xf32>
    %4 = arith.truncf %3 : vector<64x16xf32> to vector<64x16xbf16>
    %c0_2 = arith.constant 0 : index
    %c0_3 = arith.constant 0 : index
    %5 = vector.load %arg2[%c0_2, %c0_3] : memref<16x128xbf16, #tpu.memory_space<vmem>>, vector<16x128xbf16>
    %cst = arith.constant dense<0.000000e+00> : vector<64x128xf32>
    %6 = tpu.matmul %4, %5, %cst {dimension_numbers = #tpu.dot_dimension_numbers<[1], [0], [0], [1], [0, 0, 1, 1], [], []>} : vector<64x16xbf16>, vector<16x128xbf16>, vector<64x128xf32> -> vector<64x128xf32>
    %c0_4 = arith.constant 0 : index
    %c0_5 = arith.constant 0 : index
    %7 = vector.load %arg3[%c0_4, %c0_5] : memref<1x128xf32, #tpu.memory_space<vmem>>, vector<1x128xf32>
    %8 = vector.broadcast %7 : vector<1x128xf32> to vector<64x128xf32>
    %9 = arith.addf %6, %8 : vector<64x128xf32>
    %c0_6 = arith.constant 0 : index
    %c0_7 = arith.constant 0 : index
    %10 = vector.load %arg11[%c0_6, %c0_7] : memref<64x128xf32, #tpu.memory_space<vmem>>, vector<64x128xf32>
    tpu.vector_store %arg11[%c0_6, %c0_7], %9 {strides = array<i32>} : memref<64x128xf32, #tpu.memory_space<vmem>>, vector<64x128xf32>,
    %c0_8 = arith.constant 0 : index
    %c0_9 = arith.constant 0 : index
    %11 = vector.load %arg4[%c0_8, %c0_9] : memref<64x256xbf16, #tpu.memory_space<vmem>>, vector<64x256xbf16>
    %c0_10 = arith.constant 0 : index
    %c0_11 = arith.constant 0 : index
    %12 = vector.load %arg5[%c0_10, %c0_11] : memref<1x128xf32, #tpu.memory_space<vmem>>, vector<1x128xf32>
    %c0_12 = arith.constant 0 : index
    %c0_13 = arith.constant 0 : index
    %c0_14 = arith.constant 0 : index
    %13 = vector.load %arg12[%c0_12, %c0_13, %c0_14] : memref<4x8x32xf32, #tpu.memory_space<vmem>>, vector<1x8x32xf32>
    %14 = vector.shape_cast %13 : vector<1x8x32xf32> to vector<8x32xf32>
    %c1 = arith.constant 1 : index
    %c0_15 = arith.constant 0 : index
    %c0_16 = arith.constant 0 : index
    %15 = vector.load %arg12[%c1, %c0_15, %c0_16] : memref<4x8x32xf32, #tpu.memory_space<vmem>>, vector<1x8x32xf32>
    %16 = vector.shape_cast %15 : vector<1x8x32xf32> to vector<8x32xf32>
    %c2 = arith.constant 2 : index
    %c0_17 = arith.constant 0 : index
    %c0_18 = arith.constant 0 : index
    %17 = vector.load %arg12[%c2, %c0_17, %c0_18] : memref<4x8x32xf32, #tpu.memory_space<vmem>>, vector<1x8x32xf32>
    %18 = vector.shape_cast %17 : vector<1x8x32xf32> to vector<8x32xf32>
    %c3 = arith.constant 3 : index
    %c0_19 = arith.constant 0 : index
    %c0_20 = arith.constant 0 : index
    %19 = vector.load %arg12[%c3, %c0_19, %c0_20] : memref<4x8x32xf32, #tpu.memory_space<vmem>>, vector<1x8x32xf32>
    %20 = vector.shape_cast %19 : vector<1x8x32xf32> to vector<8x32xf32>
    %c0_i32_21 = arith.constant 0 : i32
    %21 = tpu.concatenate %14, %18 in 1 : vector<8x32xf32>, vector<8x32xf32> -> vector<8x64xf32>
    %22 = arith.truncf %21 : vector<8x64xf32> to vector<8x64xbf16>
    %cst_22 = arith.constant dense<0.000000e+00> : vector<8x256xf32>
    %23 = tpu.matmul %22, %11, %cst_22 {dimension_numbers = #tpu.dot_dimension_numbers<[1], [0], [0], [1], [0, 0, 1, 1], [], []>} : vector<8x64xbf16>, vector<64x256xbf16>, vector<8x256xf32> -> vector<8x256xf32>
    %c8_i32 = arith.constant 8 : i32
    %24 = arith.muli %c0_i32_21, %c8_i32 : i32
    %25 = tpu.assume_multiple %24, 8 : i32
    %26 = arith.index_cast %25 : i32 to index
    %c0_23 = arith.constant 0 : index
    %27 = vector.load %arg11[%26, %c0_23] : memref<64x128xf32, #tpu.memory_space<vmem>>, vector<8x128xf32>
    %28 = vector.extract_strided_slice %23 {offsets = [0, 0], sizes = [8, 128], strides = [1, 1]} : vector<8x256xf32> to vector<8x128xf32>
    %29 = arith.addf %27, %28 : vector<8x128xf32>
    %30 = arith.negf %29 : vector<8x128xf32>
    %31 = math.exp %30 : vector<8x128xf32>
    %cst_24 = arith.constant 1.000000e+00 : f32
    %32 = vector.broadcast %cst_24 : f32 to vector<8x128xf32>
    %33 = arith.addf %32, %31 : vector<8x128xf32>
    %34 = arith.divf %32, %33 : vector<8x128xf32>
    %35 = vector.extract_strided_slice %34 {offsets = [0, 0], sizes = [8, 32], strides = [1, 1]} : vector<8x128xf32> to vector<8x32xf32>
    %36 = vector.extract_strided_slice %34 {offsets = [0, 32], sizes = [8, 32], strides = [1, 1]} : vector<8x128xf32> to vector<8x32xf32>
    %37 = vector.extract_strided_slice %34 {offsets = [0, 64], sizes = [8, 32], strides = [1, 1]} : vector<8x128xf32> to vector<8x32xf32>
    %cst_25 = arith.constant 2.000000e+00 : f32
    %38 = vector.broadcast %cst_25 : f32 to vector<8x32xf32>
    %39 = arith.mulf %38, %37 : vector<8x32xf32>
    %cst_26 = arith.constant 1.000000e+00 : f32
    %40 = vector.broadcast %cst_26 : f32 to vector<8x32xf32>
    %41 = arith.subf %39, %40 : vector<8x32xf32>
    %42 = vector.extract_strided_slice %34 {offsets = [0, 96], sizes = [8, 32], strides = [1, 1]} : vector<8x128xf32> to vector<8x32xf32>
    %43 = arith.mulf %36, %16 : vector<8x32xf32>
    %44 = arith.mulf %35, %41 : vector<8x32xf32>
    %45 = arith.addf %43, %44 : vector<8x32xf32>
    %46 = math.tanh %45 : vector<8x32xf32>
    %47 = arith.mulf %42, %46 : vector<8x32xf32>
    %48 = vector.extract_strided_slice %23 {offsets = [0, 128], sizes = [8, 128], strides = [1, 1]} : vector<8x256xf32> to vector<8x128xf32>
    %49 = vector.broadcast %12 : vector<1x128xf32> to vector<8x128xf32>
    %50 = arith.addf %48, %49 : vector<8x128xf32>
    %51 = arith.negf %50 : vector<8x128xf32>
    %52 = math.exp %51 : vector<8x128xf32>
    %cst_27 = arith.constant 1.000000e+00 : f32
    %53 = vector.broadcast %cst_27 : f32 to vector<8x128xf32>
    %54 = arith.addf %53, %52 : vector<8x128xf32>
    %55 = arith.divf %53, %54 : vector<8x128xf32>
    %56 = vector.extract_strided_slice %55 {offsets = [0, 0], sizes = [8, 32], strides = [1, 1]} : vector<8x128xf32> to vector<8x32xf32>
    %57 = vector.extract_strided_slice %55 {offsets = [0, 32], sizes = [8, 32], strides = [1, 1]} : vector<8x128xf32> to vector<8x32xf32>
    %58 = vector.extract_strided_slice %55 {offsets = [0, 64], sizes = [8, 32], strides = [1, 1]} : vector<8x128xf32> to vector<8x32xf32>
    %cst_28 = arith.constant 2.000000e+00 : f32
    %59 = vector.broadcast %cst_28 : f32 to vector<8x32xf32>
    %60 = arith.mulf %59, %58 : vector<8x32xf32>
    %cst_29 = arith.constant 1.000000e+00 : f32
    %61 = vector.broadcast %cst_29 : f32 to vector<8x32xf32>
    %62 = arith.subf %60, %61 : vector<8x32xf32>
    %63 = vector.extract_strided_slice %55 {offsets = [0, 96], sizes = [8, 32], strides = [1, 1]} : vector<8x128xf32> to vector<8x32xf32>
    %64 = arith.mulf %57, %20 : vector<8x32xf32>
    %65 = arith.mulf %56, %62 : vector<8x32xf32>
    %66 = arith.addf %64, %65 : vector<8x32xf32>
    %67 = math.tanh %66 : vector<8x32xf32>
    %68 = arith.mulf %63, %67 : vector<8x32xf32>
    %c8_i32_30 = arith.constant 8 : i32
    %69 = arith.muli %arg0, %c8_i32_30 : i32
    %70 = arith.addi %69, %c0_i32_21 : i32
    %c1_i32 = arith.constant 1 : i32
    %71 = arith.cmpi sge, %70, %c1_i32 : i32
    %72 = arith.select %71, %68, %18 : vector<8x32xf32>
    %c1_i32_31 = arith.constant 1 : i32
    %73 = arith.cmpi sge, %70, %c1_i32_31 : i32
    %74 = arith.select %73, %66, %20 : vector<8x32xf32>
    %c1_i32_32 = arith.constant 1 : i32
    %75 = tpu.concatenate %47, %72 in 1 : vector<8x32xf32>, vector<8x32xf32> -> vector<8x64xf32>
    %76 = arith.truncf %75 : vector<8x64xf32> to vector<8x64xbf16>
    %cst_33 = arith.constant dense<0.000000e+00> : vector<8x256xf32>
    %77 = tpu.matmul %76, %11, %cst_33 {dimension_numbers = #tpu.dot_dimension_numbers<[1], [0], [0], [1], [0, 0, 1, 1], [], []>} : vector<8x64xbf16>, vector<64x256xbf16>, vector<8x256xf32> -> vector<8x256xf32>
    %c8_i32_34 = arith.constant 8 : i32
    %78 = arith.muli %c1_i32_32, %c8_i32_34 : i32
    %79 = tpu.assume_multiple %78, 8 : i32
    %80 = arith.index_cast %79 : i32 to index
    %c0_35 = arith.constant 0 : index
    %81 = vector.load %arg11[%80, %c0_35] : memref<64x128xf32, #tpu.memory_space<vmem>>, vector<8x128xf32>
    %82 = vector.extract_strided_slice %77 {offsets = [0, 0], sizes = [8, 128], strides = [1, 1]} : vector<8x256xf32> to vector<8x128xf32>
    %83 = arith.addf %81, %82 : vector<8x128xf32>
    %84 = arith.negf %83 : vector<8x128xf32>
    %85 = math.exp %84 : vector<8x128xf32>
    %cst_36 = arith.constant 1.000000e+00 : f32
    %86 = vector.broadcast %cst_36 : f32 to vector<8x128xf32>
    %87 = arith.addf %86, %85 : vector<8x128xf32>
    %88 = arith.divf %86, %87 : vector<8x128xf32>
    %89 = vector.extract_strided_slice %88 {offsets = [0, 0], sizes = [8, 32], strides = [1, 1]} : vector<8x128xf32> to vector<8x32xf32>
    %90 = vector.extract_strided_slice %88 {offsets = [0, 32], sizes = [8, 32], strides = [1, 1]} : vector<8x128xf32> to vector<8x32xf32>
    %91 = vector.extract_strided_slice %88 {offsets = [0, 64], sizes = [8, 32], strides = [1, 1]} : vector<8x128xf32> to vector<8x32xf32>
    %cst_37 = arith.constant 2.000000e+00 : f32
    %92 = vector.broadcast %cst_37 : f32 to vector<8x32xf32>
    %93 = arith.mulf %92, %91 : vector<8x32xf32>
    %cst_38 = arith.constant 1.000000e+00 : f32
    %94 = vector.broadcast %cst_38 : f32 to vector<8x32xf32>
    %95 = arith.subf %93, %94 : vector<8x32xf32>
    %96 = vector.extract_strided_slice %88 {offsets = [0, 96], sizes = [8, 32], strides = [1, 1]} : vector<8x128xf32> to vector<8x32xf32>
    %97 = arith.mulf %90, %45 : vector<8x32xf32>
    %98 = arith.mulf %89, %95 : vector<8x32xf32>
    %99 = arith.addf %97, %98 : vector<8x32xf32>
    %100 = math.tanh %99 : vector<8x32xf32>
    %101 = arith.mulf %96, %100 : vector<8x32xf32>
    %102 = vector.extract_strided_slice %77 {offsets = [0, 128], sizes = [8, 128], strides = [1, 1]} : vector<8x256xf32> to vector<8x128xf32>
    %103 = vector.broadcast %12 : vector<1x128xf32> to vector<8x128xf32>
    %104 = arith.addf %102, %103 : vector<8x128xf32>
    %105 = arith.negf %104 : vector<8x128xf32>
    %106 = math.exp %105 : vector<8x128xf32>
    %cst_39 = arith.constant 1.000000e+00 : f32
    %107 = vector.broadcast %cst_39 : f32 to vector<8x128xf32>
    %108 = arith.addf %107, %106 : vector<8x128xf32>
    %109 = arith.divf %107, %108 : vector<8x128xf32>
    %110 = vector.extract_strided_slice %109 {offsets = [0, 0], sizes = [8, 32], strides = [1, 1]} : vector<8x128xf32> to vector<8x32xf32>
    %111 = vector.extract_strided_slice %109 {offsets = [0, 32], sizes = [8, 32], strides = [1, 1]} : vector<8x128xf32> to vector<8x32xf32>
    %112 = vector.extract_strided_slice %109 {offsets = [0, 64], sizes = [8, 32], strides = [1, 1]} : vector<8x128xf32> to vector<8x32xf32>
    %cst_40 = arith.constant 2.000000e+00 : f32
    %113 = vector.broadcast %cst_40 : f32 to vector<8x32xf32>
    %114 = arith.mulf %113, %112 : vector<8x32xf32>
    %cst_41 = arith.constant 1.000000e+00 : f32
    %115 = vector.broadcast %cst_41 : f32 to vector<8x32xf32>
    %116 = arith.subf %114, %115 : vector<8x32xf32>
    %117 = vector.extract_strided_slice %109 {offsets = [0, 96], sizes = [8, 32], strides = [1, 1]} : vector<8x128xf32> to vector<8x32xf32>
    %118 = arith.mulf %111, %74 : vector<8x32xf32>
    %119 = arith.mulf %110, %116 : vector<8x32xf32>
    %120 = arith.addf %118, %119 : vector<8x32xf32>
    %121 = math.tanh %120 : vector<8x32xf32>
    %122 = arith.mulf %117, %121 : vector<8x32xf32>
    %c8_i32_42 = arith.constant 8 : i32
    %123 = arith.muli %arg0, %c8_i32_42 : i32
    %124 = arith.addi %123, %c1_i32_32 : i32
    %c1_i32_43 = arith.constant 1 : i32
    %125 = arith.cmpi sge, %124, %c1_i32_43 : i32
    %126 = arith.select %125, %122, %72 : vector<8x32xf32>
    %c1_i32_44 = arith.constant 1 : i32
    %127 = arith.cmpi sge, %124, %c1_i32_44 : i32
    %128 = arith.select %127, %120, %74 : vector<8x32xf32>
    %c2_i32 = arith.constant 2 : i32
    %129 = tpu.concatenate %101, %126 in 1 : vector<8x32xf32>, vector<8x32xf32> -> vector<8x64xf32>
    %130 = arith.truncf %129 : vector<8x64xf32> to vector<8x64xbf16>
    %cst_45 = arith.constant dense<0.000000e+00> : vector<8x256xf32>
    %131 = tpu.matmul %130, %11, %cst_45 {dimension_numbers = #tpu.dot_dimension_numbers<[1], [0], [0], [1], [0, 0, 1, 1], [], []>} : vector<8x64xbf16>, vector<64x256xbf16>, vector<8x256xf32> -> vector<8x256xf32>
    %c8_i32_46 = arith.constant 8 : i32
    %132 = arith.muli %c2_i32, %c8_i32_46 : i32
    %133 = tpu.assume_multiple %132, 8 : i32
    %134 = arith.index_cast %133 : i32 to index
    %c0_47 = arith.constant 0 : index
    %135 = vector.load %arg11[%134, %c0_47] : memref<64x128xf32, #tpu.memory_space<vmem>>, vector<8x128xf32>
    %136 = vector.extract_strided_slice %131 {offsets = [0, 0], sizes = [8, 128], strides = [1, 1]} : vector<8x256xf32> to vector<8x128xf32>
    %137 = arith.addf %135, %136 : vector<8x128xf32>
    %138 = arith.negf %137 : vector<8x128xf32>
    %139 = math.exp %138 : vector<8x128xf32>
    %cst_48 = arith.constant 1.000000e+00 : f32
    %140 = vector.broadcast %cst_48 : f32 to vector<8x128xf32>
    %141 = arith.addf %140, %139 : vector<8x128xf32>
    %142 = arith.divf %140, %141 : vector<8x128xf32>
    %143 = vector.extract_strided_slice %142 {offsets = [0, 0], sizes = [8, 32], strides = [1, 1]} : vector<8x128xf32> to vector<8x32xf32>
    %144 = vector.extract_strided_slice %142 {offsets = [0, 32], sizes = [8, 32], strides = [1, 1]} : vector<8x128xf32> to vector<8x32xf32>
    %145 = vector.extract_strided_slice %142 {offsets = [0, 64], sizes = [8, 32], strides = [1, 1]} : vector<8x128xf32> to vector<8x32xf32>
    %cst_49 = arith.constant 2.000000e+00 : f32
    %146 = vector.broadcast %cst_49 : f32 to vector<8x32xf32>
    %147 = arith.mulf %146, %145 : vector<8x32xf32>
    %cst_50 = arith.constant 1.000000e+00 : f32
    %148 = vector.broadcast %cst_50 : f32 to vector<8x32xf32>
    %149 = arith.subf %147, %148 : vector<8x32xf32>
    %150 = vector.extract_strided_slice %142 {offsets = [0, 96], sizes = [8, 32], strides = [1, 1]} : vector<8x128xf32> to vector<8x32xf32>
    %151 = arith.mulf %144, %99 : vector<8x32xf32>
    %152 = arith.mulf %143, %149 : vector<8x32xf32>
    %153 = arith.addf %151, %152 : vector<8x32xf32>
    %154 = math.tanh %153 : vector<8x32xf32>
    %155 = arith.mulf %150, %154 : vector<8x32xf32>
    %156 = vector.extract_strided_slice %131 {offsets = [0, 128], sizes = [8, 128], strides = [1, 1]} : vector<8x256xf32> to vector<8x128xf32>
    %157 = vector.broadcast %12 : vector<1x128xf32> to vector<8x128xf32>
    %158 = arith.addf %156, %157 : vector<8x128xf32>
    %159 = arith.negf %158 : vector<8x128xf32>
    %160 = math.exp %159 : vector<8x128xf32>
    %cst_51 = arith.constant 1.000000e+00 : f32
    %161 = vector.broadcast %cst_51 : f32 to vector<8x128xf32>
    %162 = arith.addf %161, %160 : vector<8x128xf32>
    %163 = arith.divf %161, %162 : vector<8x128xf32>
    %164 = vector.extract_strided_slice %163 {offsets = [0, 0], sizes = [8, 32], strides = [1, 1]} : vector<8x128xf32> to vector<8x32xf32>
    %165 = vector.extract_strided_slice %163 {offsets = [0, 32], sizes = [8, 32], strides = [1, 1]} : vector<8x128xf32> to vector<8x32xf32>
    %166 = vector.extract_strided_slice %163 {offsets = [0, 64], sizes = [8, 32], strides = [1, 1]} : vector<8x128xf32> to vector<8x32xf32>
    %cst_52 = arith.constant 2.000000e+00 : f32
    %167 = vector.broadcast %cst_52 : f32 to vector<8x32xf32>
    %168 = arith.mulf %167, %166 : vector<8x32xf32>
    %cst_53 = arith.constant 1.000000e+00 : f32
    %169 = vector.broadcast %cst_53 : f32 to vector<8x32xf32>
    %170 = arith.subf %168, %169 : vector<8x32xf32>
    %171 = vector.extract_strided_slice %163 {offsets = [0, 96], sizes = [8, 32], strides = [1, 1]} : vector<8x128xf32> to vector<8x32xf32>
    %172 = arith.mulf %165, %128 : vector<8x32xf32>
    %173 = arith.mulf %164, %170 : vector<8x32xf32>
    %174 = arith.addf %172, %173 : vector<8x32xf32>
    %175 = math.tanh %174 : vector<8x32xf32>
    %176 = arith.mulf %171, %175 : vector<8x32xf32>
    %c8_i32_54 = arith.constant 8 : i32
    %177 = arith.muli %arg0, %c8_i32_54 : i32
    %178 = arith.addi %177, %c2_i32 : i32
    %c1_i32_55 = arith.constant 1 : i32
    %179 = arith.cmpi sge, %178, %c1_i32_55 : i32
    %180 = arith.select %179, %176, %126 : vector<8x32xf32>
    %c1_i32_56 = arith.constant 1 : i32
    %181 = arith.cmpi sge, %178, %c1_i32_56 : i32
    %182 = arith.select %181, %174, %128 : vector<8x32xf32>
    %c3_i32 = arith.constant 3 : i32
    %183 = tpu.concatenate %155, %180 in 1 : vector<8x32xf32>, vector<8x32xf32> -> vector<8x64xf32>
    %184 = arith.truncf %183 : vector<8x64xf32> to vector<8x64xbf16>
    %cst_57 = arith.constant dense<0.000000e+00> : vector<8x256xf32>
    %185 = tpu.matmul %184, %11, %cst_57 {dimension_numbers = #tpu.dot_dimension_numbers<[1], [0], [0], [1], [0, 0, 1, 1], [], []>} : vector<8x64xbf16>, vector<64x256xbf16>, vector<8x256xf32> -> vector<8x256xf32>
    %c8_i32_58 = arith.constant 8 : i32
    %186 = arith.muli %c3_i32, %c8_i32_58 : i32
    %187 = tpu.assume_multiple %186, 8 : i32
    %188 = arith.index_cast %187 : i32 to index
    %c0_59 = arith.constant 0 : index
    %189 = vector.load %arg11[%188, %c0_59] : memref<64x128xf32, #tpu.memory_space<vmem>>, vector<8x128xf32>
    %190 = vector.extract_strided_slice %185 {offsets = [0, 0], sizes = [8, 128], strides = [1, 1]} : vector<8x256xf32> to vector<8x128xf32>
    %191 = arith.addf %189, %190 : vector<8x128xf32>
    %192 = arith.negf %191 : vector<8x128xf32>
    %193 = math.exp %192 : vector<8x128xf32>
    %cst_60 = arith.constant 1.000000e+00 : f32
    %194 = vector.broadcast %cst_60 : f32 to vector<8x128xf32>
    %195 = arith.addf %194, %193 : vector<8x128xf32>
    %196 = arith.divf %194, %195 : vector<8x128xf32>
    %197 = vector.extract_strided_slice %196 {offsets = [0, 0], sizes = [8, 32], strides = [1, 1]} : vector<8x128xf32> to vector<8x32xf32>
    %198 = vector.extract_strided_slice %196 {offsets = [0, 32], sizes = [8, 32], strides = [1, 1]} : vector<8x128xf32> to vector<8x32xf32>
    %199 = vector.extract_strided_slice %196 {offsets = [0, 64], sizes = [8, 32], strides = [1, 1]} : vector<8x128xf32> to vector<8x32xf32>
    %cst_61 = arith.constant 2.000000e+00 : f32
    %200 = vector.broadcast %cst_61 : f32 to vector<8x32xf32>
    %201 = arith.mulf %200, %199 : vector<8x32xf32>
    %cst_62 = arith.constant 1.000000e+00 : f32
    %202 = vector.broadcast %cst_62 : f32 to vector<8x32xf32>
    %203 = arith.subf %201, %202 : vector<8x32xf32>
    %204 = vector.extract_strided_slice %196 {offsets = [0, 96], sizes = [8, 32], strides = [1, 1]} : vector<8x128xf32> to vector<8x32xf32>
    %205 = arith.mulf %198, %153 : vector<8x32xf32>
    %206 = arith.mulf %197, %203 : vector<8x32xf32>
    %207 = arith.addf %205, %206 : vector<8x32xf32>
    %208 = math.tanh %207 : vector<8x32xf32>
    %209 = arith.mulf %204, %208 : vector<8x32xf32>
    %210 = vector.extract_strided_slice %185 {offsets = [0, 128], sizes = [8, 128], strides = [1, 1]} : vector<8x256xf32> to vector<8x128xf32>
    %211 = vector.broadcast %12 : vector<1x128xf32> to vector<8x128xf32>
    %212 = arith.addf %210, %211 : vector<8x128xf32>
    %213 = arith.negf %212 : vector<8x128xf32>
    %214 = math.exp %213 : vector<8x128xf32>
    %cst_63 = arith.constant 1.000000e+00 : f32
    %215 = vector.broadcast %cst_63 : f32 to vector<8x128xf32>
    %216 = arith.addf %215, %214 : vector<8x128xf32>
    %217 = arith.divf %215, %216 : vector<8x128xf32>
    %218 = vector.extract_strided_slice %217 {offsets = [0, 0], sizes = [8, 32], strides = [1, 1]} : vector<8x128xf32> to vector<8x32xf32>
    %219 = vector.extract_strided_slice %217 {offsets = [0, 32], sizes = [8, 32], strides = [1, 1]} : vector<8x128xf32> to vector<8x32xf32>
    %220 = vector.extract_strided_slice %217 {offsets = [0, 64], sizes = [8, 32], strides = [1, 1]} : vector<8x128xf32> to vector<8x32xf32>
    %cst_64 = arith.constant 2.000000e+00 : f32
    %221 = vector.broadcast %cst_64 : f32 to vector<8x32xf32>
    %222 = arith.mulf %221, %220 : vector<8x32xf32>
    %cst_65 = arith.constant 1.000000e+00 : f32
    %223 = vector.broadcast %cst_65 : f32 to vector<8x32xf32>
    %224 = arith.subf %222, %223 : vector<8x32xf32>
    %225 = vector.extract_strided_slice %217 {offsets = [0, 96], sizes = [8, 32], strides = [1, 1]} : vector<8x128xf32> to vector<8x32xf32>
    %226 = arith.mulf %219, %182 : vector<8x32xf32>
    %227 = arith.mulf %218, %224 : vector<8x32xf32>
    %228 = arith.addf %226, %227 : vector<8x32xf32>
    %229 = math.tanh %228 : vector<8x32xf32>
    %230 = arith.mulf %225, %229 : vector<8x32xf32>
    %c8_i32_66 = arith.constant 8 : i32
    %231 = arith.muli %arg0, %c8_i32_66 : i32
    %232 = arith.addi %231, %c3_i32 : i32
    %c1_i32_67 = arith.constant 1 : i32
    %233 = arith.cmpi sge, %232, %c1_i32_67 : i32
    %234 = arith.select %233, %230, %180 : vector<8x32xf32>
    %c1_i32_68 = arith.constant 1 : i32
    %235 = arith.cmpi sge, %232, %c1_i32_68 : i32
    %236 = arith.select %235, %228, %182 : vector<8x32xf32>
    %c4_i32 = arith.constant 4 : i32
    %237 = tpu.concatenate %209, %234 in 1 : vector<8x32xf32>, vector<8x32xf32> -> vector<8x64xf32>
    %238 = arith.truncf %237 : vector<8x64xf32> to vector<8x64xbf16>
    %cst_69 = arith.constant dense<0.000000e+00> : vector<8x256xf32>
    %239 = tpu.matmul %238, %11, %cst_69 {dimension_numbers = #tpu.dot_dimension_numbers<[1], [0], [0], [1], [0, 0, 1, 1], [], []>} : vector<8x64xbf16>, vector<64x256xbf16>, vector<8x256xf32> -> vector<8x256xf32>
    %c8_i32_70 = arith.constant 8 : i32
    %240 = arith.muli %c4_i32, %c8_i32_70 : i32
    %241 = tpu.assume_multiple %240, 8 : i32
    %242 = arith.index_cast %241 : i32 to index
    %c0_71 = arith.constant 0 : index
    %243 = vector.load %arg11[%242, %c0_71] : memref<64x128xf32, #tpu.memory_space<vmem>>, vector<8x128xf32>
    %244 = vector.extract_strided_slice %239 {offsets = [0, 0], sizes = [8, 128], strides = [1, 1]} : vector<8x256xf32> to vector<8x128xf32>
    %245 = arith.addf %243, %244 : vector<8x128xf32>
    %246 = arith.negf %245 : vector<8x128xf32>
    %247 = math.exp %246 : vector<8x128xf32>
    %cst_72 = arith.constant 1.000000e+00 : f32
    %248 = vector.broadcast %cst_72 : f32 to vector<8x128xf32>
    %249 = arith.addf %248, %247 : vector<8x128xf32>
    %250 = arith.divf %248, %249 : vector<8x128xf32>
    %251 = vector.extract_strided_slice %250 {offsets = [0, 0], sizes = [8, 32], strides = [1, 1]} : vector<8x128xf32> to vector<8x32xf32>
    %252 = vector.extract_strided_slice %250 {offsets = [0, 32], sizes = [8, 32], strides = [1, 1]} : vector<8x128xf32> to vector<8x32xf32>
    %253 = vector.extract_strided_slice %250 {offsets = [0, 64], sizes = [8, 32], strides = [1, 1]} : vector<8x128xf32> to vector<8x32xf32>
    %cst_73 = arith.constant 2.000000e+00 : f32
    %254 = vector.broadcast %cst_73 : f32 to vector<8x32xf32>
    %255 = arith.mulf %254, %253 : vector<8x32xf32>
    %cst_74 = arith.constant 1.000000e+00 : f32
    %256 = vector.broadcast %cst_74 : f32 to vector<8x32xf32>
    %257 = arith.subf %255, %256 : vector<8x32xf32>
    %258 = vector.extract_strided_slice %250 {offsets = [0, 96], sizes = [8, 32], strides = [1, 1]} : vector<8x128xf32> to vector<8x32xf32>
    %259 = arith.mulf %252, %207 : vector<8x32xf32>
    %260 = arith.mulf %251, %257 : vector<8x32xf32>
    %261 = arith.addf %259, %260 : vector<8x32xf32>
    %262 = math.tanh %261 : vector<8x32xf32>
    %263 = arith.mulf %258, %262 : vector<8x32xf32>
    %264 = vector.extract_strided_slice %239 {offsets = [0, 128], sizes = [8, 128], strides = [1, 1]} : vector<8x256xf32> to vector<8x128xf32>
    %265 = vector.broadcast %12 : vector<1x128xf32> to vector<8x128xf32>
    %266 = arith.addf %264, %265 : vector<8x128xf32>
    %267 = arith.negf %266 : vector<8x128xf32>
    %268 = math.exp %267 : vector<8x128xf32>
    %cst_75 = arith.constant 1.000000e+00 : f32
    %269 = vector.broadcast %cst_75 : f32 to vector<8x128xf32>
    %270 = arith.addf %269, %268 : vector<8x128xf32>
    %271 = arith.divf %269, %270 : vector<8x128xf32>
    %272 = vector.extract_strided_slice %271 {offsets = [0, 0], sizes = [8, 32], strides = [1, 1]} : vector<8x128xf32> to vector<8x32xf32>
    %273 = vector.extract_strided_slice %271 {offsets = [0, 32], sizes = [8, 32], strides = [1, 1]} : vector<8x128xf32> to vector<8x32xf32>
    %274 = vector.extract_strided_slice %271 {offsets = [0, 64], sizes = [8, 32], strides = [1, 1]} : vector<8x128xf32> to vector<8x32xf32>
    %cst_76 = arith.constant 2.000000e+00 : f32
    %275 = vector.broadcast %cst_76 : f32 to vector<8x32xf32>
    %276 = arith.mulf %275, %274 : vector<8x32xf32>
    %cst_77 = arith.constant 1.000000e+00 : f32
    %277 = vector.broadcast %cst_77 : f32 to vector<8x32xf32>
    %278 = arith.subf %276, %277 : vector<8x32xf32>
    %279 = vector.extract_strided_slice %271 {offsets = [0, 96], sizes = [8, 32], strides = [1, 1]} : vector<8x128xf32> to vector<8x32xf32>
    %280 = arith.mulf %273, %236 : vector<8x32xf32>
    %281 = arith.mulf %272, %278 : vector<8x32xf32>
    %282 = arith.addf %280, %281 : vector<8x32xf32>
    %283 = math.tanh %282 : vector<8x32xf32>
    %284 = arith.mulf %279, %283 : vector<8x32xf32>
    %c8_i32_78 = arith.constant 8 : i32
    %285 = arith.muli %arg0, %c8_i32_78 : i32
    %286 = arith.addi %285, %c4_i32 : i32
    %c1_i32_79 = arith.constant 1 : i32
    %287 = arith.cmpi sge, %286, %c1_i32_79 : i32
    %288 = arith.select %287, %284, %234 : vector<8x32xf32>
    %c1_i32_80 = arith.constant 1 : i32
    %289 = arith.cmpi sge, %286, %c1_i32_80 : i32
    %290 = arith.select %289, %282, %236 : vector<8x32xf32>
    %c5_i32 = arith.constant 5 : i32
    %291 = tpu.concatenate %263, %288 in 1 : vector<8x32xf32>, vector<8x32xf32> -> vector<8x64xf32>
    %292 = arith.truncf %291 : vector<8x64xf32> to vector<8x64xbf16>
    %cst_81 = arith.constant dense<0.000000e+00> : vector<8x256xf32>
    %293 = tpu.matmul %292, %11, %cst_81 {dimension_numbers = #tpu.dot_dimension_numbers<[1], [0], [0], [1], [0, 0, 1, 1], [], []>} : vector<8x64xbf16>, vector<64x256xbf16>, vector<8x256xf32> -> vector<8x256xf32>
    %c8_i32_82 = arith.constant 8 : i32
    %294 = arith.muli %c5_i32, %c8_i32_82 : i32
    %295 = tpu.assume_multiple %294, 8 : i32
    %296 = arith.index_cast %295 : i32 to index
    %c0_83 = arith.constant 0 : index
    %297 = vector.load %arg11[%296, %c0_83] : memref<64x128xf32, #tpu.memory_space<vmem>>, vector<8x128xf32>
    %298 = vector.extract_strided_slice %293 {offsets = [0, 0], sizes = [8, 128], strides = [1, 1]} : vector<8x256xf32> to vector<8x128xf32>
    %299 = arith.addf %297, %298 : vector<8x128xf32>
    %300 = arith.negf %299 : vector<8x128xf32>
    %301 = math.exp %300 : vector<8x128xf32>
    %cst_84 = arith.constant 1.000000e+00 : f32
    %302 = vector.broadcast %cst_84 : f32 to vector<8x128xf32>
    %303 = arith.addf %302, %301 : vector<8x128xf32>
    %304 = arith.divf %302, %303 : vector<8x128xf32>
    %305 = vector.extract_strided_slice %304 {offsets = [0, 0], sizes = [8, 32], strides = [1, 1]} : vector<8x128xf32> to vector<8x32xf32>
    %306 = vector.extract_strided_slice %304 {offsets = [0, 32], sizes = [8, 32], strides = [1, 1]} : vector<8x128xf32> to vector<8x32xf32>
    %307 = vector.extract_strided_slice %304 {offsets = [0, 64], sizes = [8, 32], strides = [1, 1]} : vector<8x128xf32> to vector<8x32xf32>
    %cst_85 = arith.constant 2.000000e+00 : f32
    %308 = vector.broadcast %cst_85 : f32 to vector<8x32xf32>
    %309 = arith.mulf %308, %307 : vector<8x32xf32>
    %cst_86 = arith.constant 1.000000e+00 : f32
    %310 = vector.broadcast %cst_86 : f32 to vector<8x32xf32>
    %311 = arith.subf %309, %310 : vector<8x32xf32>
    %312 = vector.extract_strided_slice %304 {offsets = [0, 96], sizes = [8, 32], strides = [1, 1]} : vector<8x128xf32> to vector<8x32xf32>
    %313 = arith.mulf %306, %261 : vector<8x32xf32>
    %314 = arith.mulf %305, %311 : vector<8x32xf32>
    %315 = arith.addf %313, %314 : vector<8x32xf32>
    %316 = math.tanh %315 : vector<8x32xf32>
    %317 = arith.mulf %312, %316 : vector<8x32xf32>
    %318 = vector.extract_strided_slice %293 {offsets = [0, 128], sizes = [8, 128], strides = [1, 1]} : vector<8x256xf32> to vector<8x128xf32>
    %319 = vector.broadcast %12 : vector<1x128xf32> to vector<8x128xf32>
    %320 = arith.addf %318, %319 : vector<8x128xf32>
    %321 = arith.negf %320 : vector<8x128xf32>
    %322 = math.exp %321 : vector<8x128xf32>
    %cst_87 = arith.constant 1.000000e+00 : f32
    %323 = vector.broadcast %cst_87 : f32 to vector<8x128xf32>
    %324 = arith.addf %323, %322 : vector<8x128xf32>
    %325 = arith.divf %323, %324 : vector<8x128xf32>
    %326 = vector.extract_strided_slice %325 {offsets = [0, 0], sizes = [8, 32], strides = [1, 1]} : vector<8x128xf32> to vector<8x32xf32>
    %327 = vector.extract_strided_slice %325 {offsets = [0, 32], sizes = [8, 32], strides = [1, 1]} : vector<8x128xf32> to vector<8x32xf32>
    %328 = vector.extract_strided_slice %325 {offsets = [0, 64], sizes = [8, 32], strides = [1, 1]} : vector<8x128xf32> to vector<8x32xf32>
    %cst_88 = arith.constant 2.000000e+00 : f32
    %329 = vector.broadcast %cst_88 : f32 to vector<8x32xf32>
    %330 = arith.mulf %329, %328 : vector<8x32xf32>
    %cst_89 = arith.constant 1.000000e+00 : f32
    %331 = vector.broadcast %cst_89 : f32 to vector<8x32xf32>
    %332 = arith.subf %330, %331 : vector<8x32xf32>
    %333 = vector.extract_strided_slice %325 {offsets = [0, 96], sizes = [8, 32], strides = [1, 1]} : vector<8x128xf32> to vector<8x32xf32>
    %334 = arith.mulf %327, %290 : vector<8x32xf32>
    %335 = arith.mulf %326, %332 : vector<8x32xf32>
    %336 = arith.addf %334, %335 : vector<8x32xf32>
    %337 = math.tanh %336 : vector<8x32xf32>
    %338 = arith.mulf %333, %337 : vector<8x32xf32>
    %c8_i32_90 = arith.constant 8 : i32
    %339 = arith.muli %arg0, %c8_i32_90 : i32
    %340 = arith.addi %339, %c5_i32 : i32
    %c1_i32_91 = arith.constant 1 : i32
    %341 = arith.cmpi sge, %340, %c1_i32_91 : i32
    %342 = arith.select %341, %338, %288 : vector<8x32xf32>
    %c1_i32_92 = arith.constant 1 : i32
    %343 = arith.cmpi sge, %340, %c1_i32_92 : i32
    %344 = arith.select %343, %336, %290 : vector<8x32xf32>
    %c6_i32 = arith.constant 6 : i32
    %345 = tpu.concatenate %317, %342 in 1 : vector<8x32xf32>, vector<8x32xf32> -> vector<8x64xf32>
    %346 = arith.truncf %345 : vector<8x64xf32> to vector<8x64xbf16>
    %cst_93 = arith.constant dense<0.000000e+00> : vector<8x256xf32>
    %347 = tpu.matmul %346, %11, %cst_93 {dimension_numbers = #tpu.dot_dimension_numbers<[1], [0], [0], [1], [0, 0, 1, 1], [], []>} : vector<8x64xbf16>, vector<64x256xbf16>, vector<8x256xf32> -> vector<8x256xf32>
    %c8_i32_94 = arith.constant 8 : i32
    %348 = arith.muli %c6_i32, %c8_i32_94 : i32
    %349 = tpu.assume_multiple %348, 8 : i32
    %350 = arith.index_cast %349 : i32 to index
    %c0_95 = arith.constant 0 : index
    %351 = vector.load %arg11[%350, %c0_95] : memref<64x128xf32, #tpu.memory_space<vmem>>, vector<8x128xf32>
    %352 = vector.extract_strided_slice %347 {offsets = [0, 0], sizes = [8, 128], strides = [1, 1]} : vector<8x256xf32> to vector<8x128xf32>
    %353 = arith.addf %351, %352 : vector<8x128xf32>
    %354 = arith.negf %353 : vector<8x128xf32>
    %355 = math.exp %354 : vector<8x128xf32>
    %cst_96 = arith.constant 1.000000e+00 : f32
    %356 = vector.broadcast %cst_96 : f32 to vector<8x128xf32>
    %357 = arith.addf %356, %355 : vector<8x128xf32>
    %358 = arith.divf %356, %357 : vector<8x128xf32>
    %359 = vector.extract_strided_slice %358 {offsets = [0, 0], sizes = [8, 32], strides = [1, 1]} : vector<8x128xf32> to vector<8x32xf32>
    %360 = vector.extract_strided_slice %358 {offsets = [0, 32], sizes = [8, 32], strides = [1, 1]} : vector<8x128xf32> to vector<8x32xf32>
    %361 = vector.extract_strided_slice %358 {offsets = [0, 64], sizes = [8, 32], strides = [1, 1]} : vector<8x128xf32> to vector<8x32xf32>
    %cst_97 = arith.constant 2.000000e+00 : f32
    %362 = vector.broadcast %cst_97 : f32 to vector<8x32xf32>
    %363 = arith.mulf %362, %361 : vector<8x32xf32>
    %cst_98 = arith.constant 1.000000e+00 : f32
    %364 = vector.broadcast %cst_98 : f32 to vector<8x32xf32>
    %365 = arith.subf %363, %364 : vector<8x32xf32>
    %366 = vector.extract_strided_slice %358 {offsets = [0, 96], sizes = [8, 32], strides = [1, 1]} : vector<8x128xf32> to vector<8x32xf32>
    %367 = arith.mulf %360, %315 : vector<8x32xf32>
    %368 = arith.mulf %359, %365 : vector<8x32xf32>
    %369 = arith.addf %367, %368 : vector<8x32xf32>
    %370 = math.tanh %369 : vector<8x32xf32>
    %371 = arith.mulf %366, %370 : vector<8x32xf32>
    %372 = vector.extract_strided_slice %347 {offsets = [0, 128], sizes = [8, 128], strides = [1, 1]} : vector<8x256xf32> to vector<8x128xf32>
    %373 = vector.broadcast %12 : vector<1x128xf32> to vector<8x128xf32>
    %374 = arith.addf %372, %373 : vector<8x128xf32>
    %375 = arith.negf %374 : vector<8x128xf32>
    %376 = math.exp %375 : vector<8x128xf32>
    %cst_99 = arith.constant 1.000000e+00 : f32
    %377 = vector.broadcast %cst_99 : f32 to vector<8x128xf32>
    %378 = arith.addf %377, %376 : vector<8x128xf32>
    %379 = arith.divf %377, %378 : vector<8x128xf32>
    %380 = vector.extract_strided_slice %379 {offsets = [0, 0], sizes = [8, 32], strides = [1, 1]} : vector<8x128xf32> to vector<8x32xf32>
    %381 = vector.extract_strided_slice %379 {offsets = [0, 32], sizes = [8, 32], strides = [1, 1]} : vector<8x128xf32> to vector<8x32xf32>
    %382 = vector.extract_strided_slice %379 {offsets = [0, 64], sizes = [8, 32], strides = [1, 1]} : vector<8x128xf32> to vector<8x32xf32>
    %cst_100 = arith.constant 2.000000e+00 : f32
    %383 = vector.broadcast %cst_100 : f32 to vector<8x32xf32>
    %384 = arith.mulf %383, %382 : vector<8x32xf32>
    %cst_101 = arith.constant 1.000000e+00 : f32
    %385 = vector.broadcast %cst_101 : f32 to vector<8x32xf32>
    %386 = arith.subf %384, %385 : vector<8x32xf32>
    %387 = vector.extract_strided_slice %379 {offsets = [0, 96], sizes = [8, 32], strides = [1, 1]} : vector<8x128xf32> to vector<8x32xf32>
    %388 = arith.mulf %381, %344 : vector<8x32xf32>
    %389 = arith.mulf %380, %386 : vector<8x32xf32>
    %390 = arith.addf %388, %389 : vector<8x32xf32>
    %391 = math.tanh %390 : vector<8x32xf32>
    %392 = arith.mulf %387, %391 : vector<8x32xf32>
    %c8_i32_102 = arith.constant 8 : i32
    %393 = arith.muli %arg0, %c8_i32_102 : i32
    %394 = arith.addi %393, %c6_i32 : i32
    %c1_i32_103 = arith.constant 1 : i32
    %395 = arith.cmpi sge, %394, %c1_i32_103 : i32
    %396 = arith.select %395, %392, %342 : vector<8x32xf32>
    %c1_i32_104 = arith.constant 1 : i32
    %397 = arith.cmpi sge, %394, %c1_i32_104 : i32
    %398 = arith.select %397, %390, %344 : vector<8x32xf32>
    %c7_i32 = arith.constant 7 : i32
    %399 = tpu.concatenate %371, %396 in 1 : vector<8x32xf32>, vector<8x32xf32> -> vector<8x64xf32>
    %400 = arith.truncf %399 : vector<8x64xf32> to vector<8x64xbf16>
    %cst_105 = arith.constant dense<0.000000e+00> : vector<8x256xf32>
    %401 = tpu.matmul %400, %11, %cst_105 {dimension_numbers = #tpu.dot_dimension_numbers<[1], [0], [0], [1], [0, 0, 1, 1], [], []>} : vector<8x64xbf16>, vector<64x256xbf16>, vector<8x256xf32> -> vector<8x256xf32>
    %c8_i32_106 = arith.constant 8 : i32
    %402 = arith.muli %c7_i32, %c8_i32_106 : i32
    %403 = tpu.assume_multiple %402, 8 : i32
    %404 = arith.index_cast %403 : i32 to index
    %c0_107 = arith.constant 0 : index
    %405 = vector.load %arg11[%404, %c0_107] : memref<64x128xf32, #tpu.memory_space<vmem>>, vector<8x128xf32>
    %406 = vector.extract_strided_slice %401 {offsets = [0, 0], sizes = [8, 128], strides = [1, 1]} : vector<8x256xf32> to vector<8x128xf32>
    %407 = arith.addf %405, %406 : vector<8x128xf32>
    %408 = arith.negf %407 : vector<8x128xf32>
    %409 = math.exp %408 : vector<8x128xf32>
    %cst_108 = arith.constant 1.000000e+00 : f32
    %410 = vector.broadcast %cst_108 : f32 to vector<8x128xf32>
    %411 = arith.addf %410, %409 : vector<8x128xf32>
    %412 = arith.divf %410, %411 : vector<8x128xf32>
    %413 = vector.extract_strided_slice %412 {offsets = [0, 0], sizes = [8, 32], strides = [1, 1]} : vector<8x128xf32> to vector<8x32xf32>
    %414 = vector.extract_strided_slice %412 {offsets = [0, 32], sizes = [8, 32], strides = [1, 1]} : vector<8x128xf32> to vector<8x32xf32>
    %415 = vector.extract_strided_slice %412 {offsets = [0, 64], sizes = [8, 32], strides = [1, 1]} : vector<8x128xf32> to vector<8x32xf32>
    %cst_109 = arith.constant 2.000000e+00 : f32
    %416 = vector.broadcast %cst_109 : f32 to vector<8x32xf32>
    %417 = arith.mulf %416, %415 : vector<8x32xf32>
    %cst_110 = arith.constant 1.000000e+00 : f32
    %418 = vector.broadcast %cst_110 : f32 to vector<8x32xf32>
    %419 = arith.subf %417, %418 : vector<8x32xf32>
    %420 = vector.extract_strided_slice %412 {offsets = [0, 96], sizes = [8, 32], strides = [1, 1]} : vector<8x128xf32> to vector<8x32xf32>
    %421 = arith.mulf %414, %369 : vector<8x32xf32>
    %422 = arith.mulf %413, %419 : vector<8x32xf32>
    %423 = arith.addf %421, %422 : vector<8x32xf32>
    %424 = math.tanh %423 : vector<8x32xf32>
    %425 = arith.mulf %420, %424 : vector<8x32xf32>
    %426 = vector.extract_strided_slice %401 {offsets = [0, 128], sizes = [8, 128], strides = [1, 1]} : vector<8x256xf32> to vector<8x128xf32>
    %427 = vector.broadcast %12 : vector<1x128xf32> to vector<8x128xf32>
    %428 = arith.addf %426, %427 : vector<8x128xf32>
    %429 = arith.negf %428 : vector<8x128xf32>
    %430 = math.exp %429 : vector<8x128xf32>
    %cst_111 = arith.constant 1.000000e+00 : f32
    %431 = vector.broadcast %cst_111 : f32 to vector<8x128xf32>
    %432 = arith.addf %431, %430 : vector<8x128xf32>
    %433 = arith.divf %431, %432 : vector<8x128xf32>
    %434 = vector.extract_strided_slice %433 {offsets = [0, 0], sizes = [8, 32], strides = [1, 1]} : vector<8x128xf32> to vector<8x32xf32>
    %435 = vector.extract_strided_slice %433 {offsets = [0, 32], sizes = [8, 32], strides = [1, 1]} : vector<8x128xf32> to vector<8x32xf32>
    %436 = vector.extract_strided_slice %433 {offsets = [0, 64], sizes = [8, 32], strides = [1, 1]} : vector<8x128xf32> to vector<8x32xf32>
    %cst_112 = arith.constant 2.000000e+00 : f32
    %437 = vector.broadcast %cst_112 : f32 to vector<8x32xf32>
    %438 = arith.mulf %437, %436 : vector<8x32xf32>
    %cst_113 = arith.constant 1.000000e+00 : f32
    %439 = vector.broadcast %cst_113 : f32 to vector<8x32xf32>
    %440 = arith.subf %438, %439 : vector<8x32xf32>
    %441 = vector.extract_strided_slice %433 {offsets = [0, 96], sizes = [8, 32], strides = [1, 1]} : vector<8x128xf32> to vector<8x32xf32>
    %442 = arith.mulf %435, %398 : vector<8x32xf32>
    %443 = arith.mulf %434, %440 : vector<8x32xf32>
    %444 = arith.addf %442, %443 : vector<8x32xf32>
    %445 = math.tanh %444 : vector<8x32xf32>
    %446 = arith.mulf %441, %445 : vector<8x32xf32>
    %c8_i32_114 = arith.constant 8 : i32
    %447 = arith.muli %arg0, %c8_i32_114 : i32
    %448 = arith.addi %447, %c7_i32 : i32
    %c1_i32_115 = arith.constant 1 : i32
    %449 = arith.cmpi sge, %448, %c1_i32_115 : i32
    %450 = arith.select %449, %446, %396 : vector<8x32xf32>
    %c1_i32_116 = arith.constant 1 : i32
    %451 = arith.cmpi sge, %448, %c1_i32_116 : i32
    %452 = arith.select %451, %444, %398 : vector<8x32xf32>
    %c8_i32_117 = arith.constant 8 : i32
    %c0_118 = arith.constant 0 : index
    %c0_119 = arith.constant 0 : index
    %c0_120 = arith.constant 0 : index
    %453 = vector.load %arg12[%c0_118, %c0_119, %c0_120] : memref<4x8x32xf32, #tpu.memory_space<vmem>>, vector<1x8x32xf32>
    %454 = vector.shape_cast %453 : vector<1x8x32xf32> to vector<8x32xf32>
    %455 = vector.shape_cast %425 : vector<8x32xf32> to vector<1x8x32xf32>
    tpu.vector_store %arg12[%c0_118, %c0_119, %c0_120], %455 {strides = array<i32>} : memref<4x8x32xf32, #tpu.memory_space<vmem>>, vector<1x8x32xf32>,
    %c1_121 = arith.constant 1 : index
    %c0_122 = arith.constant 0 : index
    %c0_123 = arith.constant 0 : index
    %456 = vector.load %arg12[%c1_121, %c0_122, %c0_123] : memref<4x8x32xf32, #tpu.memory_space<vmem>>, vector<1x8x32xf32>
    %457 = vector.shape_cast %456 : vector<1x8x32xf32> to vector<8x32xf32>
    %458 = vector.shape_cast %423 : vector<8x32xf32> to vector<1x8x32xf32>
    tpu.vector_store %arg12[%c1_121, %c0_122, %c0_123], %458 {strides = array<i32>} : memref<4x8x32xf32, #tpu.memory_space<vmem>>, vector<1x8x32xf32>,
    %c2_124 = arith.constant 2 : index
    %c0_125 = arith.constant 0 : index
    %c0_126 = arith.constant 0 : index
    %459 = vector.load %arg12[%c2_124, %c0_125, %c0_126] : memref<4x8x32xf32, #tpu.memory_space<vmem>>, vector<1x8x32xf32>
    %460 = vector.shape_cast %459 : vector<1x8x32xf32> to vector<8x32xf32>
    %461 = vector.shape_cast %450 : vector<8x32xf32> to vector<1x8x32xf32>
    tpu.vector_store %arg12[%c2_124, %c0_125, %c0_126], %461 {strides = array<i32>} : memref<4x8x32xf32, #tpu.memory_space<vmem>>, vector<1x8x32xf32>,
    %c3_127 = arith.constant 3 : index
    %c0_128 = arith.constant 0 : index
    %c0_129 = arith.constant 0 : index
    %462 = vector.load %arg12[%c3_127, %c0_128, %c0_129] : memref<4x8x32xf32, #tpu.memory_space<vmem>>, vector<1x8x32xf32>
    %463 = vector.shape_cast %462 : vector<1x8x32xf32> to vector<8x32xf32>
    %464 = vector.shape_cast %452 : vector<8x32xf32> to vector<1x8x32xf32>
    tpu.vector_store %arg12[%c3_127, %c0_128, %c0_129], %464 {strides = array<i32>} : memref<4x8x32xf32, #tpu.memory_space<vmem>>, vector<1x8x32xf32>,
    %c0_i32_130 = arith.constant 0 : i32
    %465 = arith.cmpi eq, %arg0, %c0_i32_130 : i32
    %466 = arith.extui %465 : i1 to i32
    %c0_i32_131 = arith.constant 0 : i32
    %467 = arith.cmpi ne, %466, %c0_i32_131 : i32
    scf.if %467 {
      %468 = tpu.concatenate %425, %450 in 1 : vector<8x32xf32>, vector<8x32xf32> -> vector<8x64xf32>
      %469 = arith.truncf %468 : vector<8x64xf32> to vector<8x64xbf16>
      %cst_132 = arith.constant dense<0.000000e+00> : vector<8x256xf32>
      %470 = tpu.matmul %469, %11, %cst_132 {dimension_numbers = #tpu.dot_dimension_numbers<[1], [0], [0], [1], [0, 0, 1, 1], [], []>} : vector<8x64xbf16>, vector<64x256xbf16>, vector<8x256xf32> -> vector<8x256xf32>
      %471 = vector.extract_strided_slice %470 {offsets = [0, 128], sizes = [8, 128], strides = [1, 1]} : vector<8x256xf32> to vector<8x128xf32>
      %472 = vector.broadcast %12 : vector<1x128xf32> to vector<8x128xf32>
      %473 = arith.addf %471, %472 : vector<8x128xf32>
      %474 = arith.negf %473 : vector<8x128xf32>
      %475 = math.exp %474 : vector<8x128xf32>
      %cst_133 = arith.constant 1.000000e+00 : f32
      %476 = vector.broadcast %cst_133 : f32 to vector<8x128xf32>
      %477 = arith.addf %476, %475 : vector<8x128xf32>
      %478 = arith.divf %476, %477 : vector<8x128xf32>
      %479 = vector.extract_strided_slice %478 {offsets = [0, 0], sizes = [8, 32], strides = [1, 1]} : vector<8x128xf32> to vector<8x32xf32>
      %480 = vector.extract_strided_slice %478 {offsets = [0, 32], sizes = [8, 32], strides = [1, 1]} : vector<8x128xf32> to vector<8x32xf32>
      %481 = vector.extract_strided_slice %478 {offsets = [0, 64], sizes = [8, 32], strides = [1, 1]} : vector<8x128xf32> to vector<8x32xf32>
      %cst_134 = arith.constant 2.000000e+00 : f32
      %482 = vector.broadcast %cst_134 : f32 to vector<8x32xf32>
      %483 = arith.mulf %482, %481 : vector<8x32xf32>
      %cst_135 = arith.constant 1.000000e+00 : f32
      %484 = vector.broadcast %cst_135 : f32 to vector<8x32xf32>
      %485 = arith.subf %483, %484 : vector<8x32xf32>
      %486 = vector.extract_strided_slice %478 {offsets = [0, 96], sizes = [8, 32], strides = [1, 1]} : vector<8x128xf32> to vector<8x32xf32>
      %487 = arith.mulf %480, %452 : vector<8x32xf32>
      %488 = arith.mulf %479, %485 : vector<8x32xf32>
      %489 = arith.addf %487, %488 : vector<8x32xf32>
      %490 = math.tanh %489 : vector<8x32xf32>
      %491 = arith.mulf %486, %490 : vector<8x32xf32>
      %c0_136 = arith.constant 0 : index
      %c0_137 = arith.constant 0 : index
      %492 = vector.load %arg6[%c0_136, %c0_137] : memref<32x8xf32, #tpu.memory_space<vmem>>, vector<32x8xf32>
      %cst_138 = arith.constant dense<0.000000e+00> : vector<8x8xf32>
      %493 = tpu.matmul %491, %492, %cst_138 {dimension_numbers = #tpu.dot_dimension_numbers<[1], [0], [0], [1], [0, 0, 1, 1], [], []>} : vector<8x32xf32>, vector<32x8xf32>, vector<8x8xf32> -> vector<8x8xf32>
      %c0_139 = arith.constant 0 : index
      %c0_140 = arith.constant 0 : index
      %494 = vector.load %arg7[%c0_139, %c0_140] : memref<1x8xf32, #tpu.memory_space<vmem>>, vector<1x8xf32>
      %495 = vector.broadcast %494 : vector<1x8xf32> to vector<8x8xf32>
      %496 = arith.addf %493, %495 : vector<8x8xf32>
      %cst_141 = arith.constant dense<0xFF800000> : vector<8xf32>
      %497 = vector.multi_reduction <maximumf>, %496, %cst_141 [1] : vector<8x8xf32> to vector<8xf32>
      %498 = vector.shape_cast %497 : vector<8xf32> to vector<8x1xf32>
      %499 = vector.broadcast %498 : vector<8x1xf32> to vector<8x8xf32>
      %500 = arith.subf %496, %499 : vector<8x8xf32>
      %501 = math.exp %500 : vector<8x8xf32>
      %cst_142 = arith.constant dense<0.000000e+00> : vector<8xf32>
      %502 = vector.multi_reduction <add>, %501, %cst_142 [1] : vector<8x8xf32> to vector<8xf32>
      %503 = vector.shape_cast %502 : vector<8xf32> to vector<8x1xf32>
      %504 = math.log %503 : vector<8x1xf32>
      %505 = vector.broadcast %504 : vector<8x1xf32> to vector<8x8xf32>
      %506 = arith.subf %500, %505 : vector<8x8xf32>
      %c0_143 = arith.constant 0 : index
      %c0_144 = arith.constant 0 : index
      %507 = vector.load %arg8[%c0_143, %c0_144] : memref<8x8xf32, #tpu.memory_space<vmem>>, vector<8x8xf32>
      tpu.vector_store %arg8[%c0_143, %c0_144], %506 {strides = array<i32>} : memref<8x8xf32, #tpu.memory_space<vmem>>, vector<8x8xf32>,
      %c0_145 = arith.constant 0 : index
      %c0_146 = arith.constant 0 : index
      %c0_147 = arith.constant 0 : index
      %508 = vector.load %arg9[%c0_145, %c0_146, %c0_147] : memref<2x8x32xf32, #tpu.memory_space<vmem>>, vector<1x8x32xf32>
      %509 = vector.shape_cast %508 : vector<1x8x32xf32> to vector<8x32xf32>
      %510 = vector.shape_cast %425 : vector<8x32xf32> to vector<1x8x32xf32>
      tpu.vector_store %arg9[%c0_145, %c0_146, %c0_147], %510 {strides = array<i32>} : memref<2x8x32xf32, #tpu.memory_space<vmem>>, vector<1x8x32xf32>,
      %c0_148 = arith.constant 0 : index
      %c0_149 = arith.constant 0 : index
      %c0_150 = arith.constant 0 : index
      %511 = vector.load %arg10[%c0_148, %c0_149, %c0_150] : memref<2x8x32xf32, #tpu.memory_space<vmem>>, vector<1x8x32xf32>
      %512 = vector.shape_cast %511 : vector<1x8x32xf32> to vector<8x32xf32>
      %513 = vector.shape_cast %423 : vector<8x32xf32> to vector<1x8x32xf32>
      tpu.vector_store %arg10[%c0_148, %c0_149, %c0_150], %513 {strides = array<i32>} : memref<2x8x32xf32, #tpu.memory_space<vmem>>, vector<1x8x32xf32>,
      %c1_151 = arith.constant 1 : index
      %c0_152 = arith.constant 0 : index
      %c0_153 = arith.constant 0 : index
      %514 = vector.load %arg9[%c1_151, %c0_152, %c0_153] : memref<2x8x32xf32, #tpu.memory_space<vmem>>, vector<1x8x32xf32>
      %515 = vector.shape_cast %514 : vector<1x8x32xf32> to vector<8x32xf32>
      %516 = vector.shape_cast %491 : vector<8x32xf32> to vector<1x8x32xf32>
      tpu.vector_store %arg9[%c1_151, %c0_152, %c0_153], %516 {strides = array<i32>} : memref<2x8x32xf32, #tpu.memory_space<vmem>>, vector<1x8x32xf32>,
      %c1_154 = arith.constant 1 : index
      %c0_155 = arith.constant 0 : index
      %c0_156 = arith.constant 0 : index
      %517 = vector.load %arg10[%c1_154, %c0_155, %c0_156] : memref<2x8x32xf32, #tpu.memory_space<vmem>>, vector<1x8x32xf32>
      %518 = vector.shape_cast %517 : vector<1x8x32xf32> to vector<8x32xf32>
      %519 = vector.shape_cast %489 : vector<8x32xf32> to vector<1x8x32xf32>
      tpu.vector_store %arg10[%c1_154, %c0_155, %c0_156], %519 {strides = array<i32>} : memref<2x8x32xf32, #tpu.memory_space<vmem>>, vector<1x8x32xf32>,
    } else {
    }
    return
  }
  func.func @transform_0(%arg0: i32) -> (i32, i32) {
    %c0_i32 = arith.constant 0 : i32
    %c0_i32_0 = arith.constant 0 : i32
    return %arg0, %c0_i32 : i32, i32
  }
  func.func @transform_1(%arg0: i32) -> (i32, i32) {
    %c0_i32 = arith.constant 0 : i32
    %c0_i32_0 = arith.constant 0 : i32
    %c0_i32_1 = arith.constant 0 : i32
    return %c0_i32, %c0_i32_0 : i32, i32
  }
  func.func @transform_2(%arg0: i32) -> (i32, i32) {
    %c0_i32 = arith.constant 0 : i32
    %c0_i32_0 = arith.constant 0 : i32
    %c0_i32_1 = arith.constant 0 : i32
    return %c0_i32, %c0_i32_0 : i32, i32
  }
  func.func @transform_3(%arg0: i32) -> (i32, i32) {
    %c0_i32 = arith.constant 0 : i32
    %c0_i32_0 = arith.constant 0 : i32
    %c0_i32_1 = arith.constant 0 : i32
    return %c0_i32, %c0_i32_0 : i32, i32
  }
  func.func @transform_4(%arg0: i32) -> (i32, i32) {
    %c0_i32 = arith.constant 0 : i32
    %c0_i32_0 = arith.constant 0 : i32
    %c0_i32_1 = arith.constant 0 : i32
    return %c0_i32, %c0_i32_0 : i32, i32
  }
  func.func @transform_5(%arg0: i32) -> (i32, i32) {
    %c0_i32 = arith.constant 0 : i32
    %c0_i32_0 = arith.constant 0 : i32
    %c0_i32_1 = arith.constant 0 : i32
    return %c0_i32, %c0_i32_0 : i32, i32
  }
  func.func @transform_6(%arg0: i32) -> (i32, i32) {
    %c0_i32 = arith.constant 0 : i32
    %c0_i32_0 = arith.constant 0 : i32
    %c0_i32_1 = arith.constant 0 : i32
    return %c0_i32, %c0_i32_0 : i32, i32
  }
  func.func @transform_7(%arg0: i32) -> (i32, i32) {
    %c0_i32 = arith.constant 0 : i32
    %c0_i32_0 = arith.constant 0 : i32
    %c0_i32_1 = arith.constant 0 : i32
    return %c0_i32, %c0_i32_0 : i32, i32
  }
  func.func @transform_8(%arg0: i32) -> (i32, i32, i32) {
    %c0_i32 = arith.constant 0 : i32
    %c0_i32_0 = arith.constant 0 : i32
    %c0_i32_1 = arith.constant 0 : i32
    %c0_i32_2 = arith.constant 0 : i32
    return %c0_i32, %c0_i32_0, %c0_i32_1 : i32, i32, i32
  }
  func.func @transform_9(%arg0: i32) -> (i32, i32, i32) {
    %c0_i32 = arith.constant 0 : i32
    %c0_i32_0 = arith.constant 0 : i32
    %c0_i32_1 = arith.constant 0 : i32
    %c0_i32_2 = arith.constant 0 : i32
    return %c0_i32, %c0_i32_0, %c0_i32_1 : i32, i32, i32
  }
}

</mosaic_0001>

<bundles_post_ra>
// kernel: lstm_model_forward.1
= control target key start
LH: loop header
LB: loop body
LE: loop exit
PB: predicated region body
PF: predicated region fallthrough
CT: control target
= control target key end

     0   :  { %vm34_vm0 = vcmask 261120   ;;  %v1581_v0 = vmov 0.0   ;;  %v1582_v2 = vmov 0   ;;  %vm66_vm1 = vcmask 130048   ;;  %s1583_s30 = smov 32   ;;  %s1584_s15 = smov 64   ;;  %s1996_s3 = inlined_call_operand.vmem [shape: bf16[64,256], index: 3, kind: input, shape index: {}]   ;;  %s1997_s1 = inlined_call_operand.vmem [shape: bf16[16,128], index: 1, kind: input, shape index: {}]   ;;  %s1998_s0 = inlined_call_operand.vmem [shape: f32[64,16], index: 0, kind: input, shape index: {}]   ;;  %s1999_s2 = inlined_call_operand.vmem [shape: f32[1,128], index: 2, kind: input, shape index: {}]   ;;  %s2000_s4 = inlined_call_operand.vmem [shape: f32[1,128], index: 4, kind: input, shape index: {}]   ;;  %s2001_s8 = inlined_call_operand.vmem [shape: f32[2,8,32], index: 8, kind: output, shape index: {1}]   ;;  %s2002_s5 = inlined_call_operand.vmem [shape: f32[32,8], index: 5, kind: input, shape index: {}]   ;;  %s2003_s9 = inlined_call_operand.vmem [shape: f32[2,8,32], index: 9, kind: output, shape index: {2}]   ;;  %s2004_s6 = inlined_call_operand.vmem [shape: f32[1,8], index: 6, kind: input, shape index: {}]   ;;  %s2005_s7 = inlined_call_operand.vmem [shape: f32[8,8], index: 7, kind: output, shape index: {0}]  }
   0x1   :  { %37 = vst.msk [vmem:[#allocation3 + $0x10] sm:$0xff] %vm34_vm0, %v1581_v0  ;;  %35 = vst.msk [vmem:[#allocation3] sm:$0xff] %vm34_vm0, %v1581_v0  ;;  %v1649_v1 = vld [vmem:[%s1996_s3 + $0x4] ss:$8 sps:$4 sm:$0xff]   ;;  %251 = vmatprep.mubr.bf16.mxu1 %v1582_v2  ;;  %v1655_v3 = vld [vmem:[%s1996_s3] ss:$8 sps:$4 sm:$0xff]  }
   0x2   :  { %36 = vst.msk [vmem:[#allocation3 + $0x8] sm:$0xff] %vm34_vm0, %v1581_v0  ;;  %38 = vst.msk [vmem:[#allocation3 + $0x18] sm:$0xff] %vm34_vm0, %v1581_v0  ;;  %219 = vmatprep.subr.bf16.mxu1 %v1649_v1  ;;  %v1661_v4 = vld [vmem:[%s1996_s3 + $0x14] ss:$8 sps:$4 sm:$0xff]   ;;  %v1666_v5 = vld [vmem:[%s1996_s3 + $0x10] ss:$8 sps:$4 sm:$0xff]  }
   0x3   :  { %220 = vmatpush1.bf16.msra.mxu1 %v1655_v3  ;;  %v1474_v6 = vld [vmem:[%s1997_s1] sm:$0xff]   ;;  %v40_v9 = vld [vmem:[%s1998_s0 + $0x8] sm:$0xff]  ;;  %v41_v10 = vld [vmem:[%s1998_s0 + $0x10] sm:$0xff]  ;;  %vm215_vm2 = vcmask 523264   ;;  %vm1587_vm3 = vmmov 0   ;;  %vm1325_vm4 = vcmask 64512  }
   0x4   :  { %221 = vmatprep.subr.bf16.mxu1 %v1661_v4  ;;  %v1676_v7 = vld [vmem:[%s1996_s3 + $0x24] ss:$8 sps:$4 sm:$0xff]   ;;  %1434 = vmatprep.subr.bf16.mxu0 %v1474_v6  ;;  %v42_v12 = vld [vmem:[%s1998_s0 + $0x18] sm:$0xff]  ;;  %v1696_v14 = vld [vmem:[%s1996_s3 + $0x20] ss:$8 sps:$4 sm:$0xff]  }
   0x5   :  { %v39_v8 = vld [vmem:[%s1998_s0] sm:$0xff]  ;;  %1435 = vmatpush3.bf16.msra.mxu0 %v1474_v6  ;;  %v48_v15 = vpack.c.bf16 %v42_v12, %v41_v10  ;;  %v1705_v16 = vld [vmem:[%s1996_s3 + $0x34] ss:$8 sps:$4 sm:$0xff]   ;;  %v1714_v18 = vld [vmem:[%s1996_s3 + $0x30] ss:$8 sps:$4 sm:$0xff]  }
   0x6   :  { %v47_v11 = vpack.c.bf16 %v40_v9, %v39_v8  ;;  %350 = vmatprep.subr.bf16.mxu0 %v1649_v1  ;;  %v1747_v27 = vld [vmem:[%s1999_s2] ss:$0 sm:$0xff]  ;;  %s1585_s2 = smov 96   ;;  %v44_v47 = vld [vmem:[%s1998_s0 + $0x28] sm:$0xff]  ;;  %v45_v48 = vld [vmem:[%s1998_s0 + $0x30] sm:$0xff] }
   0x7   :  { %222 = vmatpush1.bf16.msra.mxu1 %v1666_v5  ;;  %v43_v46 = vld [vmem:[%s1998_s0 + $0x20] sm:$0xff]  ;;  %v46_v51 = vld [vmem:[%s1998_s0 + $0x38] sm:$0xff] }
   0x8   :  { %v1690_v13 = vld [vmem:[#allocation3 + $0x10] sm:$0xff]  ;;  %223 = vmatprep.subr.bf16.mxu1 %v1676_v7  ;;  %1436 = vmatprep.mubr.msk.bf16.mxu0 %vm66_vm1, %v47_v11  ;;  %v161_v19 = vld [vmem:[#allocation3] sm:$0xff]  ;;  %v49_v50 = vpack.c.bf16 %v44_v47, %v43_v46  ;;  %v50_v52 = vpack.c.bf16 %v46_v51, %v45_v48 }
   0x9   :  { %169 = vrot.lane.b32.xlu0 %v1690_v13, %s1583_s30  ;;  %v163_v17 = vld [vmem:[#allocation3 + $0x8] sm:$0xff]  ;;  %1437 = vmatmul.mubr.msk.bf16.vlgmr.msra.gmra.mrb[0].mxu0 %vm66_vm1, %v48_v15  ;;  %v1799_v8 = vld [vmem:[%s2000_s4] ss:$0 sm:$0xff] }
   0xa   :  { %271 = vrot.lane.b32.xlu1 %v163_v17, %s1583_s30  ;;  %351 = vmatpush1.bf16.msra.mxu0 %v1655_v3 }
   0xb   :  { %224 = vmatpush1.bf16.msra.mxu1 %v1696_v14  ;;  %352 = vmatprep.subr.bf16.mxu0 %v1661_v4 }
   0xc   :  { %225 = vmatprep.subr.bf16.mxu1 %v1705_v16  ;;  %1440 = vmatprep.mubr.msk.bf16.mxu0 %vm66_vm1, %v49_v50 }
   0xe   :  { %353 = vmatpush1.bf16.msra.mxu0 %v1666_v5 }
   0xf   :  { %226 = vmatpush1.bf16.msra.mxu1 %v1714_v18  ;;  %354 = vmatprep.subr.bf16.mxu0 %v1676_v7 }
  0x10   :  { %465 = vmatprep.subr.bf16.mxu1 %v1649_v1 }
  0x11   :  { %1441 = vmatmul.mubr.msk.bf16.gmra.mrb[4].mxu0 %vm66_vm1, %v50_v52 }
  0x12   :  { %355 = vmatpush1.bf16.msra.mxu0 %v1696_v14  ;;  %382 = vmatprep.mubr.bf16.mxu0 %v1582_v2 }
  0x13   :  { %356 = vmatprep.subr.bf16.mxu0 %v1705_v16 }
  0x16   :  { %357 = vmatpush1.bf16.msra.mxu0 %v1714_v18 }
  0x17   :  { %580 = vmatprep.subr.bf16.mxu0 %v1649_v1 }
  0x7b   :  { %v170_v20 = vpop.permute.xlu0 %169 }
  0x7c   :  { %v173_v21 = vsel %vm34_vm0, %v161_v19, %v170_v20  ;;  %v272_v42 = vpop.permute.xlu1 %271 }
  0x7d   :  { %v174_v22 = vpack.c.bf16 %v173_v21, %v173_v21 }
  0x7f   :  { %1376 = vmatmul.mubr.msk.bf16.vlgmr.msra.gmra.mrb[0].mxu1 %vm215_vm2, %v174_v22 }
  0x80   :  { %466 = vmatpush1.bf16.msra.mxu1 %v1655_v3  ;;  %497 = vmatprep.mubr.bf16.mxu1 %v1582_v2 }
  0x81   :  { %467 = vmatprep.subr.bf16.mxu1 %v1661_v4 }
  0x84   :  { %468 = vmatpush1.bf16.msra.mxu1 %v1666_v5 }
  0x85   :  { %469 = vmatprep.subr.bf16.mxu1 %v1676_v7 }
  0x88   :  { %470 = vmatpush1.bf16.msra.mxu1 %v1696_v14 }
  0x89   :  { %471 = vmatprep.subr.bf16.mxu1 %v1705_v16 }
  0x8c   :  { %472 = vmatpush1.bf16.msra.mxu1 %v1714_v18 }
  0x8d   :  { %695 = vmatprep.subr.bf16.mxu1 %v1649_v1 }
  0xdc   :  { %v1738_v23 = vpop.f32.mrb[0].mxu0 }
  0xdd   :  { %v113_v24 = vpop.f32.mrb[1].mxu0 }
  0xde   :  { %v1740_v25 = vpop.f32.mrb[2].mxu0  ;;  %v114_v28 = vadd.f32 %v1747_v27, %v113_v24 }
  0xdf   :  { %v1742_v26 = vpop.f32.mrb[3].mxu0 }
  0xe0   :  { %v117_v6 = vadd.f32 %v1747_v27, %v1742_v26 }
  0xe4   :  { %v1775_v56 = vpop.f32.mrb[4].mxu0 }
  0xe5   :  { %v1777_v57 = vpop.f32.mrb[5].mxu0 }
  0xe6   :  { %v1779_v58 = vpop.f32.mrb[6].mxu0 }
  0xe7   :  { %v1781_v59 = vpop.f32.mrb[7].mxu0 }
 0x152   :  { %v253_v29 = vpop.f32.mrb[0].mxu1 }
 0x153   :  { %v261_v30 = vadd.f32 %v253_v29, %v114_v28  ;;  %v255_v31 = vpop.f32.mrb[1].mxu1 }
 0x154   :  { %v257_v32 = vpop.f32.mrb[2].mxu1 }
 0x155   :  { %v1377_v33 = vmul.f32 -1.442695, %v261_v30  ;;  %v258_v34 = vpop.f32.mrb[3].mxu1 }
 0x157   :  { %1481 = vpow2.f32 %v1377_v33  ;;  %v167_v33 = vld [vmem:[#allocation3 + $0x18] sm:$0xff] }
 0x161   :  { %v1482_v35 = vpop.eup %1481 }
 0x162   :  { %v265_v36 = vadd.f32 1.0, %v1482_v35 }
 0x164   :  { %1483 = vrcp.f32 %v265_v36 }
 0x16e   :  { %v1484_v37 = vpop.eup %1483 }
 0x16f   :  { %v268_v38 = vmul.f32 2.0, %v1484_v37  ;;  %v274_v43 = vmul.f32 %v1484_v37, %v272_v42 }
 0x171   :  { %v1378_v39 = vadd.f32 -1.0, %v268_v38 }
 0x173   :  { %276 = vrot.lane.b32.xlu0 %v1378_v39, %s1584_s15 }
 0x1e5   :  { %v277_v40 = vpop.permute.xlu0 %276 }
 0x1e6   :  { %v279_v41 = vmul.f32 %v1484_v37, %v277_v40 }
 0x1e8   :  { %281 = vrot.lane.b32.xlu1 %v279_v41, %s1583_s30 }
 0x1ec   :  { %332 = vrot.lane.b32.xlu1 %v1690_v13, %s1585_s2 }
 0x25a   :  { %v282_v44 = vpop.permute.xlu1 %281 }
 0x25b   :  { %v1754_v45 = vadd.f32 %v282_v44, %v274_v43 }
 0x25d   :  { %1485 = vtanh.f32 %v1754_v45 }
 0x25e   :  { %v333_v49 = vpop.permute.xlu1 %332 }
 0x25f   :  { %342 = vrot.lane.b32.xlu1 %v333_v49, %s1584_s15 }
 0x267   :  { %v1486_v53 = vpop.eup %1485 }
 0x268   :  { %287 = vrot.lane.b32.xlu0 %v1486_v53, %s1584_s15 }
 0x2d1   :  { %v343_v60 = vpop.permute.xlu1 %342 }
 0x2da   :  { %v288_v54 = vpop.permute.xlu0 %287 }
 0x2db   :  { %v290_v55 = vmul.f32 %v1484_v37, %v288_v54 }
 0x2dd   :  { %338 = vrot.lane.b32.xlu0 %v290_v55, %s1583_s30  ;;  %v122_v55 = vadd.f32 %v1738_v23, %v1747_v27 }
 0x34f   :  { %v339_v61 = vpop.permute.xlu0 %338 }
 0x350   :  { %v345_v62 = vsel %vm34_vm0, %v339_v61, %v343_v60 }
 0x351   :  { %v346_v63 = vpack.c.bf16 %v345_v62, %v345_v62 }
 0x353   :  { %1382 = vmatmul.mubr.msk.bf16.vlgmr.msra.gmra.mrb[8].mxu0 %vm215_vm2, %v346_v63 }
 0x354   :  { %581 = vmatpush1.bf16.msra.mxu0 %v1655_v3  ;;  %612 = vmatprep.mubr.bf16.mxu0 %v1582_v2 }
 0x355   :  { %582 = vmatprep.subr.bf16.mxu0 %v1661_v4 }
 0x358   :  { %583 = vmatpush1.bf16.msra.mxu0 %v1666_v5 }
 0x359   :  { %584 = vmatprep.subr.bf16.mxu0 %v1676_v7 }
 0x35c   :  { %585 = vmatpush1.bf16.msra.mxu0 %v1696_v14 }
 0x35d   :  { %586 = vmatprep.subr.bf16.mxu0 %v1705_v16 }
 0x360   :  { %587 = vmatpush1.bf16.msra.mxu0 %v1714_v18 }
 0x361   :  { %810 = vmatprep.subr.bf16.mxu0 %v1649_v1 }
 0x426   :  { %v384_v9 = vpop.f32.mrb[8].mxu0 }
 0x427   :  { %v393_v10 = vadd.f32 %v384_v9, %v117_v6  ;;  %v386_v11 = vpop.f32.mrb[9].mxu0 }
 0x428   :  { %v419_v12 = vadd.f32 %v1799_v8, %v386_v11  ;;  %v388_v13 = vpop.f32.mrb[10].mxu0 }
 0x429   :  { %v1383_v15 = vmul.f32 -1.442695, %v393_v10  ;;  %v389_v17 = vpop.f32.mrb[11].mxu0 }
 0x42a   :  { %v1385_v19 = vmul.f32 -1.442695, %v419_v12 }
 0x42b   :  { %1487 = vpow2.f32 %v1383_v15 }
 0x42c   :  { %1489 = vpow2.f32 %v1385_v19 }
 0x435   :  { %v1488_v20 = vpop.eup %1487 }
 0x436   :  { %v1490_v21 = vpop.eup %1489  ;;  %v397_v22 = vadd.f32 1.0, %v1488_v20 }
 0x437   :  { %v423_v24 = vadd.f32 1.0, %v1490_v21 }
 0x438   :  { %1491 = vrcp.f32 %v397_v22 }
 0x439   :  { %1493 = vrcp.f32 %v423_v24 }
 0x442   :  { %v1492_v26 = vpop.eup %1491 }
 0x443   :  { %v1494_v28 = vpop.eup %1493  ;;  %v400_v29 = vmul.f32 2.0, %v1492_v26  ;;  %v402_v39 = vmul.f32 %v1492_v26, %v1754_v45 }
 0x444   :  { %v426_v30 = vmul.f32 2.0, %v1494_v28 }
 0x445   :  { %v1384_v31 = vadd.f32 -1.0, %v400_v29 }
 0x446   :  { %v1386_v32 = vadd.f32 -1.0, %v426_v30 }
 0x447   :  { %404 = vrot.lane.b32.xlu0 %v1384_v31, %s1584_s15 }
 0x448   :  { %430 = vrot.lane.b32.xlu1 %v1386_v32, %s1584_s15 }
 0x44b   :  { %307 = vrot.lane.b32.xlu0 %v167_v33, %s1583_s30 }
 0x4b9   :  { %v405_v34 = vpop.permute.xlu0 %404 }
 0x4ba   :  { %v407_v35 = vmul.f32 %v1492_v26, %v405_v34  ;;  %v431_v36 = vpop.permute.xlu1 %430 }
 0x4bb   :  { %v433_v37 = vmul.f32 %v1494_v28, %v431_v36 }
 0x4bc   :  { %409 = vrot.lane.b32.xlu1 %v407_v35, %s1583_s30 }
 0x4bd   :  { %435 = vrot.lane.b32.xlu0 %v433_v37, %s1583_s30  ;;  %v308_v38 = vpop.permute.xlu0 %307 }
 0x4be   :  { %v428_v40 = vmul.f32 %v1494_v28, %v308_v38 }
 0x52e   :  { %v410_v41 = vpop.permute.xlu1 %409 }
 0x52f   :  { %v412_v42 = vadd.f32 %v410_v41, %v402_v39  ;;  %v436_v43 = vpop.permute.xlu0 %435 }
 0x530   :  { %v438_v44 = vadd.f32 %v436_v43, %v428_v40 }
 0x531   :  { %1495 = vtanh.f32 %v412_v42 }
 0x532   :  { %1497 = vtanh.f32 %v438_v44 }
 0x53b   :  { %v1496_v46 = vpop.eup %1495 }
 0x53c   :  { %v1498_v47 = vpop.eup %1497  ;;  %415 = vrot.lane.b32.xlu1 %v1496_v46, %s1584_s15 }
 0x53d   :  { %441 = vrot.lane.b32.xlu0 %v1498_v47, %s1584_s15 }
 0x5ae   :  { %v416_v48 = vpop.permute.xlu1 %415 }
 0x5af   :  { %v418_v49 = vmul.f32 %v1492_v26, %v416_v48  ;;  %v442_v50 = vpop.permute.xlu0 %441  ;;  %v125_v48 = vadd.f32 %v1740_v25, %v1747_v27 }
 0x5b0   :  { %v444_v51 = vmul.f32 %v1494_v28, %v442_v50 }
 0x5b1   :  { %453 = vrot.lane.b32.xlu1 %v418_v49, %s1583_s30 }
 0x5b2   :  { %457 = vrot.lane.b32.xlu0 %v444_v51, %s1584_s15 }
 0x623   :  { %v454_v45 = vpop.permute.xlu1 %453 }
 0x624   :  { %v458_v52 = vpop.permute.xlu0 %457 }
 0x625   :  { %v460_v53 = vsel %vm34_vm0, %v454_v45, %v458_v52 }
 0x626   :  { %v461_v54 = vpack.c.bf16 %v460_v53, %v460_v53 }
 0x628   :  { %1387 = vmatmul.mubr.msk.bf16.vlgmr.msra.gmra.mrb[4].mxu1 %vm215_vm2, %v461_v54 }
 0x629   :  { %696 = vmatpush1.bf16.msra.mxu1 %v1655_v3  ;;  %727 = vmatprep.mubr.bf16.mxu1 %v1582_v2 }
 0x62a   :  { %697 = vmatprep.subr.bf16.mxu1 %v1661_v4 }
 0x62d   :  { %698 = vmatpush1.bf16.msra.mxu1 %v1666_v5 }
 0x62e   :  { %699 = vmatprep.subr.bf16.mxu1 %v1676_v7 }
 0x631   :  { %700 = vmatpush1.bf16.msra.mxu1 %v1696_v14 }
 0x632   :  { %701 = vmatprep.subr.bf16.mxu1 %v1705_v16 }
 0x635   :  { %702 = vmatpush1.bf16.msra.mxu1 %v1714_v18 }
 0x636   :  { %925 = vmatprep.subr.bf16.mxu1 %v1649_v1 }
 0x6fb   :  { %v499_v60 = vpop.f32.mrb[4].mxu1 }
 0x6fc   :  { %v508_v61 = vadd.f32 %v499_v60, %v122_v55  ;;  %v501_v62 = vpop.f32.mrb[5].mxu1 }
 0x6fd   :  { %v534_v63 = vadd.f32 %v1799_v8, %v501_v62  ;;  %v503_v6 = vpop.f32.mrb[6].mxu1 }
 0x6fe   :  { %v1388_v9 = vmul.f32 -1.442695, %v508_v61  ;;  %v504_v10 = vpop.f32.mrb[7].mxu1 }
 0x6ff   :  { %v1390_v11 = vmul.f32 -1.442695, %v534_v63 }
 0x700   :  { %1499 = vpow2.f32 %v1388_v9 }
 0x701   :  { %1501 = vpow2.f32 %v1390_v11 }
 0x70a   :  { %v1500_v12 = vpop.eup %1499 }
 0x70b   :  { %v1502_v13 = vpop.eup %1501  ;;  %v512_v15 = vadd.f32 1.0, %v1500_v12 }
 0x70c   :  { %v538_v17 = vadd.f32 1.0, %v1502_v13 }
 0x70d   :  { %1503 = vrcp.f32 %v512_v15 }
 0x70e   :  { %1505 = vrcp.f32 %v538_v17 }
 0x717   :  { %v1504_v19 = vpop.eup %1503 }
 0x718   :  { %v1506_v20 = vpop.eup %1505  ;;  %v515_v23 = vmul.f32 2.0, %v1504_v19  ;;  %v517_v31 = vmul.f32 %v1504_v19, %v412_v42 }
 0x719   :  { %v541_v21 = vmul.f32 2.0, %v1506_v20  ;;  %v543_v33 = vmul.f32 %v1506_v20, %v438_v44 }
 0x71a   :  { %v1389_v22 = vadd.f32 -1.0, %v515_v23 }
 0x71b   :  { %v1391_v24 = vadd.f32 -1.0, %v541_v21 }
 0x71c   :  { %519 = vrot.lane.b32.xlu1 %v1389_v22, %s1584_s15 }
 0x71d   :  { %545 = vrot.lane.b32.xlu0 %v1391_v24, %s1584_s15 }
 0x78e   :  { %v520_v26 = vpop.permute.xlu1 %519 }
 0x78f   :  { %v522_v28 = vmul.f32 %v1504_v19, %v520_v26  ;;  %v546_v29 = vpop.permute.xlu0 %545 }
 0x790   :  { %v548_v30 = vmul.f32 %v1506_v20, %v546_v29 }
 0x791   :  { %524 = vrot.lane.b32.xlu1 %v522_v28, %s1583_s30 }
 0x792   :  { %550 = vrot.lane.b32.xlu0 %v548_v30, %s1583_s30 }
 0x803   :  { %v525_v32 = vpop.permute.xlu1 %524 }
 0x804   :  { %v527_v34 = vadd.f32 %v525_v32, %v517_v31  ;;  %v551_v35 = vpop.permute.xlu0 %550 }
 0x805   :  { %v553_v36 = vadd.f32 %v551_v35, %v543_v33 }
 0x806   :  { %1507 = vtanh.f32 %v527_v34 }
 0x807   :  { %1509 = vtanh.f32 %v553_v36 }
 0x810   :  { %v1508_v37 = vpop.eup %1507 }
 0x811   :  { %v1510_v38 = vpop.eup %1509  ;;  %530 = vrot.lane.b32.xlu1 %v1508_v37, %s1584_s15 }
 0x812   :  { %556 = vrot.lane.b32.xlu0 %v1510_v38, %s1584_s15  ;;  %v130_v38 = vadd.f32 %v1747_v27, %v1777_v57 }
 0x883   :  { %v531_v39 = vpop.permute.xlu1 %530 }
 0x884   :  { %v533_v40 = vmul.f32 %v1504_v19, %v531_v39  ;;  %v557_v41 = vpop.permute.xlu0 %556 }
 0x885   :  { %v559_v43 = vmul.f32 %v1506_v20, %v557_v41 }
 0x886   :  { %568 = vrot.lane.b32.xlu1 %v533_v40, %s1583_s30 }
 0x887   :  { %572 = vrot.lane.b32.xlu0 %v559_v43, %s1584_s15 }
 0x8f8   :  { %v569_v42 = vpop.permute.xlu1 %568 }
 0x8f9   :  { %v573_v44 = vpop.permute.xlu0 %572 }
 0x8fa   :  { %v575_v46 = vsel %vm34_vm0, %v569_v42, %v573_v44 }
 0x8fb   :  { %v576_v47 = vpack.c.bf16 %v575_v46, %v575_v46 }
 0x8fd   :  { %1392 = vmatmul.mubr.msk.bf16.vlgmr.msra.gmra.mrb[12].mxu0 %vm215_vm2, %v576_v47 }
 0x8fe   :  { %811 = vmatpush1.bf16.msra.mxu0 %v1655_v3  ;;  %842 = vmatprep.mubr.bf16.mxu0 %v1582_v2 }
 0x8ff   :  { %812 = vmatprep.subr.bf16.mxu0 %v1661_v4 }
 0x902   :  { %813 = vmatpush1.bf16.msra.mxu0 %v1666_v5 }
 0x903   :  { %814 = vmatprep.subr.bf16.mxu0 %v1676_v7 }
 0x906   :  { %815 = vmatpush1.bf16.msra.mxu0 %v1696_v14 }
 0x907   :  { %816 = vmatprep.subr.bf16.mxu0 %v1705_v16 }
 0x90a   :  { %817 = vmatpush1.bf16.msra.mxu0 %v1714_v18 }
 0x90b   :  { %1040 = vmatprep.subr.bf16.mxu0 %v1649_v1 }
 0x9d0   :  { %v614_v49 = vpop.f32.mrb[12].mxu0 }
 0x9d1   :  { %v623_v50 = vadd.f32 %v614_v49, %v125_v48  ;;  %v616_v51 = vpop.f32.mrb[13].mxu0 }
 0x9d2   :  { %v649_v45 = vadd.f32 %v1799_v8, %v616_v51  ;;  %v618_v52 = vpop.f32.mrb[14].mxu0 }
 0x9d3   :  { %v1393_v53 = vmul.f32 -1.442695, %v623_v50  ;;  %v619_v54 = vpop.f32.mrb[15].mxu0 }
 0x9d4   :  { %v1395_v55 = vmul.f32 -1.442695, %v649_v45 }
 0x9d5   :  { %1511 = vpow2.f32 %v1393_v53 }
 0x9d6   :  { %1513 = vpow2.f32 %v1395_v55 }
 0x9df   :  { %v1512_v60 = vpop.eup %1511 }
 0x9e0   :  { %v1514_v61 = vpop.eup %1513  ;;  %v627_v62 = vadd.f32 1.0, %v1512_v60 }
 0x9e1   :  { %v653_v63 = vadd.f32 1.0, %v1514_v61 }
 0x9e2   :  { %1515 = vrcp.f32 %v627_v62 }
 0x9e3   :  { %1517 = vrcp.f32 %v653_v63 }
 0x9ec   :  { %v1516_v6 = vpop.eup %1515 }
 0x9ed   :  { %v1518_v9 = vpop.eup %1517  ;;  %v630_v25 = vmul.f32 2.0, %v1516_v6  ;;  %v632_v20 = vmul.f32 %v1516_v6, %v527_v34 }
 0x9ee   :  { %v656_v10 = vmul.f32 2.0, %v1518_v9  ;;  %v658_v21 = vmul.f32 %v1518_v9, %v553_v36 }
 0x9ef   :  { %v1394_v11 = vadd.f32 -1.0, %v630_v25 }
 0x9f0   :  { %v1396_v12 = vadd.f32 -1.0, %v656_v10 }
 0x9f1   :  { %634 = vrot.lane.b32.xlu1 %v1394_v11, %s1584_s15 }
 0x9f2   :  { %660 = vrot.lane.b32.xlu0 %v1396_v12, %s1584_s15 }
 0xa63   :  { %v635_v13 = vpop.permute.xlu1 %634 }
 0xa64   :  { %v637_v15 = vmul.f32 %v1516_v6, %v635_v13  ;;  %v661_v17 = vpop.permute.xlu0 %660 }
 0xa65   :  { %v663_v19 = vmul.f32 %v1518_v9, %v661_v17 }
 0xa66   :  { %639 = vrot.lane.b32.xlu1 %v637_v15, %s1583_s30 }
 0xa67   :  { %665 = vrot.lane.b32.xlu0 %v663_v19, %s1583_s30 }
 0xad8   :  { %v640_v23 = vpop.permute.xlu1 %639 }
 0xad9   :  { %v642_v22 = vadd.f32 %v640_v23, %v632_v20  ;;  %v666_v24 = vpop.permute.xlu0 %665 }
 0xada   :  { %v668_v26 = vadd.f32 %v666_v24, %v658_v21 }
 0xadb   :  { %1519 = vtanh.f32 %v642_v22 }
 0xadc   :  { %1521 = vtanh.f32 %v668_v26 }
 0xae5   :  { %v1520_v28 = vpop.eup %1519 }
 0xae6   :  { %v1522_v29 = vpop.eup %1521  ;;  %645 = vrot.lane.b32.xlu1 %v1520_v28, %s1584_s15 }
 0xae7   :  { %671 = vrot.lane.b32.xlu0 %v1522_v29, %s1584_s15 }
 0xb58   :  { %v646_v30 = vpop.permute.xlu1 %645 }
 0xb59   :  { %v648_v31 = vmul.f32 %v1516_v6, %v646_v30  ;;  %v672_v32 = vpop.permute.xlu0 %671 }
 0xb5a   :  { %v674_v33 = vmul.f32 %v1518_v9, %v672_v32 }
 0xb5b   :  { %683 = vrot.lane.b32.xlu1 %v648_v31, %s1583_s30 }
 0xb5c   :  { %687 = vrot.lane.b32.xlu0 %v674_v33, %s1584_s15 }
 0xbcd   :  { %v684_v34 = vpop.permute.xlu1 %683 }
 0xbce   :  { %v688_v35 = vpop.permute.xlu0 %687 }
 0xbcf   :  { %v690_v36 = vsel %vm34_vm0, %v684_v34, %v688_v35 }
 0xbd0   :  { %v691_v37 = vpack.c.bf16 %v690_v36, %v690_v36 }
 0xbd2   :  { %1397 = vmatmul.mubr.msk.bf16.vlgmr.msra.gmra.mrb[8].mxu1 %vm215_vm2, %v691_v37 }
 0xbd3   :  { %926 = vmatpush1.bf16.msra.mxu1 %v1655_v3  ;;  %957 = vmatprep.mubr.bf16.mxu1 %v1582_v2 }
 0xbd4   :  { %927 = vmatprep.subr.bf16.mxu1 %v1661_v4 }
 0xbd7   :  { %928 = vmatpush1.bf16.msra.mxu1 %v1666_v5 }
 0xbd8   :  { %929 = vmatprep.subr.bf16.mxu1 %v1676_v7 }
 0xbdb   :  { %930 = vmatpush1.bf16.msra.mxu1 %v1696_v14 }
 0xbdc   :  { %931 = vmatprep.subr.bf16.mxu1 %v1705_v16 }
 0xbdf   :  { %932 = vmatpush1.bf16.msra.mxu1 %v1714_v18 }
 0xbe0   :  { %1173 = vmatprep.subr.bf16.mxu1 %v1649_v1 }
 0xca5   :  { %v729_v39 = vpop.f32.mrb[8].mxu1 }
 0xca6   :  { %v738_v40 = vadd.f32 %v729_v39, %v130_v38  ;;  %v731_v41 = vpop.f32.mrb[9].mxu1 }
 0xca7   :  { %v764_v43 = vadd.f32 %v1799_v8, %v731_v41  ;;  %v733_v42 = vpop.f32.mrb[10].mxu1 }
 0xca8   :  { %v1398_v44 = vmul.f32 -1.442695, %v738_v40  ;;  %v734_v46 = vpop.f32.mrb[11].mxu1 }
 0xca9   :  { %v1400_v47 = vmul.f32 -1.442695, %v764_v43 }
 0xcaa   :  { %1523 = vpow2.f32 %v1398_v44 }
 0xcab   :  { %1525 = vpow2.f32 %v1400_v47 }
 0xcb4   :  { %v1524_v48 = vpop.eup %1523 }
 0xcb5   :  { %v1526_v49 = vpop.eup %1525  ;;  %v742_v50 = vadd.f32 1.0, %v1524_v48 }
 0xcb6   :  { %v768_v51 = vadd.f32 1.0, %v1526_v49 }
 0xcb7   :  { %1527 = vrcp.f32 %v742_v50 }
 0xcb8   :  { %1529 = vrcp.f32 %v768_v51 }
 0xcc1   :  { %v1528_v1 = vpop.eup %1527 }
 0xcc2   :  { %v1530_v45 = vpop.eup %1529  ;;  %v745_v57 = vmul.f32 2.0, %v1528_v1  ;;  %v747_v63 = vmul.f32 %v1528_v1, %v642_v22 }
 0xcc3   :  { %v771_v52 = vmul.f32 2.0, %v1530_v45  ;;  %v773_v9 = vmul.f32 %v1530_v45, %v668_v26  ;;  %v133_v26 = vadd.f32 %v1747_v27, %v1781_v59 }
 0xcc4   :  { %v1399_v53 = vadd.f32 -1.0, %v745_v57 }
 0xcc5   :  { %v1401_v54 = vadd.f32 -1.0, %v771_v52 }
 0xcc6   :  { %749 = vrot.lane.b32.xlu1 %v1399_v53, %s1584_s15 }
 0xcc7   :  { %775 = vrot.lane.b32.xlu0 %v1401_v54, %s1584_s15 }
 0xd38   :  { %v750_v55 = vpop.permute.xlu1 %749 }
 0xd39   :  { %v752_v60 = vmul.f32 %v1528_v1, %v750_v55  ;;  %v776_v61 = vpop.permute.xlu0 %775 }
 0xd3a   :  { %v778_v62 = vmul.f32 %v1530_v45, %v776_v61 }
 0xd3b   :  { %754 = vrot.lane.b32.xlu1 %v752_v60, %s1583_s30 }
 0xd3c   :  { %780 = vrot.lane.b32.xlu0 %v778_v62, %s1583_s30 }
 0xdad   :  { %v755_v6 = vpop.permute.xlu1 %754 }
 0xdae   :  { %v757_v25 = vadd.f32 %v755_v6, %v747_v63  ;;  %v781_v10 = vpop.permute.xlu0 %780 }
 0xdaf   :  { %v783_v11 = vadd.f32 %v781_v10, %v773_v9  ;;  %v138_v10 = vadd.f32 %v1775_v56, %v1747_v27 }
 0xdb0   :  { %1531 = vtanh.f32 %v757_v25 }
 0xdb1   :  { %1533 = vtanh.f32 %v783_v11 }
 0xdba   :  { %v1532_v12 = vpop.eup %1531 }
 0xdbb   :  { %v1534_v13 = vpop.eup %1533  ;;  %760 = vrot.lane.b32.xlu1 %v1532_v12, %s1584_s15 }
 0xdbc   :  { %786 = vrot.lane.b32.xlu0 %v1534_v13, %s1584_s15 }
 0xe2d   :  { %v761_v15 = vpop.permute.xlu1 %760 }
 0xe2e   :  { %v763_v17 = vmul.f32 %v1528_v1, %v761_v15  ;;  %v787_v19 = vpop.permute.xlu0 %786 }
 0xe2f   :  { %v789_v20 = vmul.f32 %v1530_v45, %v787_v19 }
 0xe30   :  { %798 = vrot.lane.b32.xlu1 %v763_v17, %s1583_s30 }
 0xe31   :  { %802 = vrot.lane.b32.xlu0 %v789_v20, %s1584_s15 }
 0xea2   :  { %v799_v23 = vpop.permute.xlu1 %798 }
 0xea3   :  { %v803_v21 = vpop.permute.xlu0 %802 }
 0xea4   :  { %v805_v22 = vsel %vm34_vm0, %v799_v23, %v803_v21 }
 0xea5   :  { %v806_v24 = vpack.c.bf16 %v805_v22, %v805_v22 }
 0xea7   :  { %1402 = vmatmul.mubr.msk.bf16.vlgmr.msra.gmra.mrb[16].mxu0 %vm215_vm2, %v806_v24 }
 0xea8   :  { %1041 = vmatpush1.bf16.msra.mxu0 %v1655_v3  ;;  %1072 = vmatprep.mubr.bf16.mxu0 %v1582_v2 }
 0xea9   :  { %1042 = vmatprep.subr.bf16.mxu0 %v1661_v4 }
 0xeac   :  { %1043 = vmatpush1.bf16.msra.mxu0 %v1666_v5 }
 0xead   :  { %1044 = vmatprep.subr.bf16.mxu0 %v1676_v7 }
 0xeb0   :  { %1045 = vmatpush1.bf16.msra.mxu0 %v1696_v14 }
 0xeb1   :  { %1046 = vmatprep.subr.bf16.mxu0 %v1705_v16 }
 0xeb4   :  { %1047 = vmatpush1.bf16.msra.mxu0 %v1714_v18 }
 0xf7a   :  { %v844_v28 = vpop.f32.mrb[16].mxu0 }
 0xf7b   :  { %v853_v29 = vadd.f32 %v844_v28, %v133_v26  ;;  %v846_v30 = vpop.f32.mrb[17].mxu0 }
 0xf7c   :  { %v879_v31 = vadd.f32 %v1799_v8, %v846_v30  ;;  %v848_v32 = vpop.f32.mrb[18].mxu0 }
 0xf7d   :  { %v1403_v33 = vmul.f32 -1.442695, %v853_v29  ;;  %v849_v34 = vpop.f32.mrb[19].mxu0 }
 0xf7e   :  { %v1405_v35 = vmul.f32 -1.442695, %v879_v31 }
 0xf7f   :  { %1535 = vpow2.f32 %v1403_v33 }
 0xf80   :  { %1537 = vpow2.f32 %v1405_v35 }
 0xf89   :  { %v1536_v36 = vpop.eup %1535 }
 0xf8a   :  { %v1538_v37 = vpop.eup %1537  ;;  %v857_v38 = vadd.f32 1.0, %v1536_v36 }
 0xf8b   :  { %v883_v39 = vadd.f32 1.0, %v1538_v37 }
 0xf8c   :  { %1539 = vrcp.f32 %v857_v38 }
 0xf8d   :  { %1541 = vrcp.f32 %v883_v39 }
 0xf96   :  { %v1540_v40 = vpop.eup %1539 }
 0xf97   :  { %v1542_v41 = vpop.eup %1541  ;;  %v860_v59 = vmul.f32 2.0, %v1540_v40  ;;  %v862_v50 = vmul.f32 %v1540_v40, %v757_v25 }
 0xf98   :  { %v886_v43 = vmul.f32 2.0, %v1542_v41  ;;  %v888_v1 = vmul.f32 %v1542_v41, %v783_v11 }
 0xf99   :  { %v1404_v42 = vadd.f32 -1.0, %v860_v59 }
 0xf9a   :  { %v1406_v44 = vadd.f32 -1.0, %v886_v43 }
 0xf9b   :  { %864 = vrot.lane.b32.xlu1 %v1404_v42, %s1584_s15 }
 0xf9c   :  { %890 = vrot.lane.b32.xlu0 %v1406_v44, %s1584_s15  ;;  %v141_v44 = vadd.f32 %v1779_v58, %v1747_v27 }
0x100d   :  { %v865_v46 = vpop.permute.xlu1 %864 }
0x100e   :  { %v867_v47 = vmul.f32 %v1540_v40, %v865_v46  ;;  %v891_v48 = vpop.permute.xlu0 %890 }
0x100f   :  { %v893_v49 = vmul.f32 %v1542_v41, %v891_v48 }
0x1010   :  { %869 = vrot.lane.b32.xlu1 %v867_v47, %s1583_s30 }
0x1011   :  { %895 = vrot.lane.b32.xlu0 %v893_v49, %s1583_s30 }
0x1082   :  { %v870_v51 = vpop.permute.xlu1 %869 }
0x1083   :  { %v872_v45 = vadd.f32 %v870_v51, %v862_v50  ;;  %v896_v57 = vpop.permute.xlu0 %895 }
0x1084   :  { %v898_v52 = vadd.f32 %v896_v57, %v888_v1 }
0x1085   :  { %1543 = vtanh.f32 %v872_v45 }
0x1086   :  { %1545 = vtanh.f32 %v898_v52 }
0x108f   :  { %v1544_v53 = vpop.eup %1543 }
0x1090   :  { %v1546_v54 = vpop.eup %1545  ;;  %875 = vrot.lane.b32.xlu1 %v1544_v53, %s1584_s15 }
0x1091   :  { %901 = vrot.lane.b32.xlu0 %v1546_v54, %s1584_s15 }
0x1102   :  { %v876_v55 = vpop.permute.xlu1 %875 }
0x1103   :  { %v878_v60 = vmul.f32 %v1540_v40, %v876_v55  ;;  %v902_v61 = vpop.permute.xlu0 %901 }
0x1104   :  { %v904_v62 = vmul.f32 %v1542_v41, %v902_v61 }
0x1105   :  { %913 = vrot.lane.b32.xlu1 %v878_v60, %s1583_s30 }
0x1106   :  { %917 = vrot.lane.b32.xlu0 %v904_v62, %s1584_s15 }
0x1177   :  { %v914_v63 = vpop.permute.xlu1 %913 }
0x1178   :  { %v918_v6 = vpop.permute.xlu0 %917 }
0x1179   :  { %v920_v9 = vsel %vm34_vm0, %v914_v63, %v918_v6 }
0x117a   :  { %v921_v25 = vpack.c.bf16 %v920_v9, %v920_v9 }
0x117c   :  { %1407 = vmatmul.mubr.msk.bf16.vlgmr.msra.gmra.mrb[12].mxu1 %vm215_vm2, %v921_v25 }
0x117d   :  { %1174 = vmatpush1.bf16.msra.mxu1 %v1655_v3  ;;  %1205 = vmatprep.mubr.bf16.mxu1 %v1582_v2 }
0x117e   :  { %1175 = vmatprep.subr.bf16.mxu1 %v1661_v4 }
0x1181   :  { %1176 = vmatpush1.bf16.msra.mxu1 %v1666_v5 }
0x1182   :  { %1177 = vmatprep.subr.bf16.mxu1 %v1676_v7 }
0x1185   :  { %1178 = vmatpush1.bf16.msra.mxu1 %v1696_v14 }
0x1186   :  { %1179 = vmatprep.subr.bf16.mxu1 %v1705_v16 }
0x1189   :  { %1180 = vmatpush1.bf16.msra.mxu1 %v1714_v18 }
0x124f   :  { %v959_v11 = vpop.f32.mrb[12].mxu1 }
0x1250   :  { %v968_v12 = vadd.f32 %v959_v11, %v138_v10  ;;  %v961_v3 = vpop.f32.mrb[13].mxu1 }
0x1251   :  { %v994_v2 = vadd.f32 %v1799_v8, %v961_v3  ;;  %v963_v13 = vpop.f32.mrb[14].mxu1 }
0x1252   :  { %v1408_v4 = vmul.f32 -1.442695, %v968_v12  ;;  %v964_v15 = vpop.f32.mrb[15].mxu1 }
0x1253   :  { %v1410_v5 = vmul.f32 -1.442695, %v994_v2 }
0x1254   :  { %1547 = vpow2.f32 %v1408_v4 }
0x1255   :  { %1549 = vpow2.f32 %v1410_v5 }
0x125e   :  { %v1548_v7 = vpop.eup %1547 }
0x125f   :  { %v1550_v14 = vpop.eup %1549  ;;  %v972_v17 = vadd.f32 1.0, %v1548_v7 }
0x1260   :  { %v998_v16 = vadd.f32 1.0, %v1550_v14 }
0x1261   :  { %1551 = vrcp.f32 %v972_v17 }
0x1262   :  { %1553 = vrcp.f32 %v998_v16 }
0x126b   :  { %v1552_v18 = vpop.eup %1551 }
0x126c   :  { %v1554_v19 = vpop.eup %1553  ;;  %v975_v56 = vmul.f32 2.0, %v1552_v18  ;;  %v977_v29 = vmul.f32 %v1552_v18, %v872_v45 }
0x126d   :  { %v1001_v20 = vmul.f32 2.0, %v1554_v19  ;;  %v1003_v31 = vmul.f32 %v1554_v19, %v898_v52 }
0x126e   :  { %v1409_v23 = vadd.f32 -1.0, %v975_v56 }
0x126f   :  { %v1411_v21 = vadd.f32 -1.0, %v1001_v20 }
0x1270   :  { %979 = vrot.lane.b32.xlu1 %v1409_v23, %s1584_s15 }
0x1271   :  { %1005 = vrot.lane.b32.xlu0 %v1411_v21, %s1584_s15 }
0x12e2   :  { %v980_v22 = vpop.permute.xlu1 %979 }
0x12e3   :  { %v982_v24 = vmul.f32 %v1552_v18, %v980_v22  ;;  %v1006_v26 = vpop.permute.xlu0 %1005 }
0x12e4   :  { %v1008_v28 = vmul.f32 %v1554_v19, %v1006_v26 }
0x12e5   :  { %984 = vrot.lane.b32.xlu1 %v982_v24, %s1583_s30 }
0x12e6   :  { %1010 = vrot.lane.b32.xlu0 %v1008_v28, %s1583_s30 }
0x1357   :  { %v985_v30 = vpop.permute.xlu1 %984 }
0x1358   :  { %v987_v32 = vadd.f32 %v985_v30, %v977_v29  ;;  %v1011_v33 = vpop.permute.xlu0 %1010 }
0x1359   :  { %v1013_v34 = vadd.f32 %v1011_v33, %v1003_v31 }
0x135a   :  { %1555 = vtanh.f32 %v987_v32 }
0x135b   :  { %1557 = vtanh.f32 %v1013_v34 }
0x1364   :  { %v1556_v35 = vpop.eup %1555 }
0x1365   :  { %v1558_v36 = vpop.eup %1557  ;;  %990 = vrot.lane.b32.xlu1 %v1556_v35, %s1584_s15 }
0x1366   :  { %1016 = vrot.lane.b32.xlu0 %v1558_v36, %s1584_s15 }
0x13d7   :  { %v991_v37 = vpop.permute.xlu1 %990 }
0x13d8   :  { %v993_v38 = vmul.f32 %v1552_v18, %v991_v37  ;;  %v1017_v39 = vpop.permute.xlu0 %1016  ;;  %v1586_v37 = vmov 0.0|0.0  }
0x13d9   :  { %v1019_v40 = vmul.f32 %v1554_v19, %v1017_v39  ;;  %1455 = vmatprep.subr.bf16.mxu0 %v1586_v37  ;;  %v1240_v39 = vld [vmem:[%s2002_s5 + $0x8] sm:$0xff] }
0x13da   :  { %1028 = vrot.lane.b32.xlu1 %v993_v38, %s1583_s30  ;;  %v1239_v38 = vld [vmem:[%s2002_s5] sm:$0xff] }
0x13db   :  { %1032 = vrot.lane.b32.xlu0 %v1019_v40, %s1584_s15  ;;  %v1241_v40 = vld [vmem:[%s2002_s5 + $0x10] sm:$0xff] }
0x144c   :  { %v1029_v41 = vpop.permute.xlu1 %1028 }
0x144d   :  { %v1033_v59 = vpop.permute.xlu0 %1032 }
0x144e   :  { %v1035_v43 = vsel %vm34_vm0, %v1029_v41, %v1033_v59  ;;  %v1456_v41 = vpack.c.bf16 %v1240_v39, %v1239_v38  ;;  %v1242_v59 = vld [vmem:[%s2002_s5 + $0x18] sm:$0xff] }
0x144f   :  { %v1036_v42 = vpack.c.bf16 %v1035_v43, %v1035_v43  ;;  %v1459_v43 = vpack.c.bf16 %v1242_v59, %v1241_v40 }
0x1451   :  { %1412 = vmatmul.mubr.msk.bf16.vlgmr.msra.gmra.mrb[20].mxu0 %vm215_vm2, %v1036_v42 }
0x1452   :  { %1452 = vmatprep.mubr.msk.f32.mxu0 %vm1587_vm3, %v1581_v0  ;;  %1457 = vmatpush3.bf16.msra.mxu0 %v1456_v41 }
0x1453   :  { %1458 = vmatprep.subr.bf16.mxu0 %v1586_v37 }
0x1456   :  { %1460 = vmatpush3.bf16.msra.mxu0 %v1459_v43 }
0x1524   :  { %v1074_v46 = vpop.f32.mrb[20].mxu0 }
0x1525   :  { %v1083_v47 = vadd.f32 %v1074_v46, %v141_v44  ;;  %v1076_v48 = vpop.f32.mrb[21].mxu0 }
0x1526   :  { %v1109_v49 = vadd.f32 %v1799_v8, %v1076_v48  ;;  %v1078_v50 = vpop.f32.mrb[22].mxu0  ;;  %v1420_v48 = vld [vmem:[%s2004_s6] ss:$0 sm:$0xff] }
0x1527   :  { %v1413_v51 = vmul.f32 -1.442695, %v1083_v47  ;;  %v1079_v1 = vpop.f32.mrb[23].mxu0 }
0x1528   :  { %v1415_v45 = vmul.f32 -1.442695, %v1109_v49 }
0x1529   :  { %1559 = vpow2.f32 %v1413_v51 }
0x152a   :  { %1561 = vpow2.f32 %v1415_v45 }
0x1533   :  { %v1560_v57 = vpop.eup %1559 }
0x1534   :  { %v1562_v52 = vpop.eup %1561  ;;  %v1087_v53 = vadd.f32 1.0, %v1560_v57 }
0x1535   :  { %v1113_v54 = vadd.f32 1.0, %v1562_v52 }
0x1536   :  { %1563 = vrcp.f32 %v1087_v53 }
0x1537   :  { %1565 = vrcp.f32 %v1113_v54 }
0x1540   :  { %v1564_v55 = vpop.eup %1563 }
0x1541   :  { %v1566_v60 = vpop.eup %1565  ;;  %v1090_v27 = vmul.f32 2.0, %v1564_v55  ;;  %v1092_v10 = vmul.f32 %v1564_v55, %v987_v32 }
0x1542   :  { %v1116_v58 = vmul.f32 2.0, %v1566_v60  ;;  %v1118_v12 = vmul.f32 %v1566_v60, %v1013_v34 }
0x1543   :  { %v1414_v61 = vadd.f32 -1.0, %v1090_v27 }
0x1544   :  { %v1416_v62 = vadd.f32 -1.0, %v1116_v58 }
0x1545   :  { %1094 = vrot.lane.b32.xlu1 %v1414_v61, %s1584_s15 }
0x1546   :  { %1120 = vrot.lane.b32.xlu0 %v1416_v62, %s1584_s15 }
0x15b7   :  { %v1095_v63 = vpop.permute.xlu1 %1094 }
0x15b8   :  { %v1097_v6 = vmul.f32 %v1564_v55, %v1095_v63  ;;  %v1121_v9 = vpop.permute.xlu0 %1120 }
0x15b9   :  { %v1123_v25 = vmul.f32 %v1566_v60, %v1121_v9 }
0x15ba   :  { %1099 = vrot.lane.b32.xlu1 %v1097_v6, %s1583_s30 }
0x15bb   :  { %1125 = vrot.lane.b32.xlu0 %v1123_v25, %s1583_s30 }
0x162c   :  { %v1100_v11 = vpop.permute.xlu1 %1099 }
0x162d   :  { %v1102_v3 = vadd.f32 %v1100_v11, %v1092_v10  ;;  %v1126_v2 = vpop.permute.xlu0 %1125 }
0x162e   :  { %v1929_v13 = vadd.f32 %v1126_v2, %v1118_v12 }
0x162f   :  { %1567 = vtanh.f32 %v1102_v3 }
0x1630   :  { %1569 = vtanh.f32 %v1929_v13 }
0x1639   :  { %v1568_v4 = vpop.eup %1567 }
0x163a   :  { %v1570_v15 = vpop.eup %1569  ;;  %1105 = vrot.lane.b32.xlu1 %v1568_v4, %s1584_s15 }
0x163b   :  { %1131 = vrot.lane.b32.xlu0 %v1570_v15, %s1584_s15 }
0x16ac   :  { %v1106_v5 = vpop.permute.xlu1 %1105 }
0x16ad   :  { %v1108_v7 = vmul.f32 %v1564_v55, %v1106_v5  ;;  %v1132_v14 = vpop.permute.xlu0 %1131 }
0x16ae   :  { %v1934_v17 = vmul.f32 %v1566_v60, %v1132_v14 }
0x16af   :  { %1143 = vrot.lane.b32.xlu1 %v1108_v7, %s1583_s30 }
0x16b0   :  { %1165 = vrot.lane.b32.xlu0 %v1934_v17, %s1584_s15 }
0x1721   :  { %v1144_v16 = vpop.permute.xlu1 %1143 }
0x1722   :  { %1146 = vst.msk [vmem:[#allocation3] sm:$0xff] %vm34_vm0, %v1144_v16  ;;  %1339 = vst.msk [vmem:[%s2001_s8] sm:$0xff] %vm34_vm0, %v1144_v16  ;;  %v1166_v18 = vpop.permute.xlu0 %1165 }
0x1723   :  { %v1168_v19 = vsel %vm34_vm0, %v1144_v16, %v1166_v18 }
0x1724   :  { %v1169_v56 = vpack.c.bf16 %v1168_v19, %v1168_v19 }
0x1726   :  { %1417 = vmatmul.mubr.msk.bf16.vlgmr.msra.gmra.mrb[16].mxu1 %vm215_vm2, %v1169_v56 }
0x17f9   :  { %v1207_v20 = vpop.f32.mrb[16].mxu1 }
0x17fa   :  { %v1208_v23 = vpop.f32.mrb[17].mxu1 }
0x17fb   :  { %v1213_v21 = vadd.f32 %v1799_v8, %v1208_v23  ;;  %v1210_v22 = vpop.f32.mrb[18].mxu1 }
0x17fc   :  { %v1211_v24 = vpop.f32.mrb[19].mxu1 }
0x17fd   :  { %v1418_v26 = vmul.f32 -1.442695, %v1213_v21 }
0x17ff   :  { %1571 = vpow2.f32 %v1418_v26 }
0x1809   :  { %v1572_v28 = vpop.eup %1571 }
0x180a   :  { %v1217_v29 = vadd.f32 1.0, %v1572_v28 }
0x180c   :  { %1573 = vrcp.f32 %v1217_v29 }
0x1816   :  { %v1574_v30 = vpop.eup %1573 }
0x1817   :  { %v1220_v31 = vmul.f32 2.0, %v1574_v30  ;;  %v1222_v35 = vmul.f32 %v1574_v30, %v1929_v13 }
0x1819   :  { %v1419_v32 = vadd.f32 -1.0, %v1220_v31 }
0x181b   :  { %1224 = vrot.lane.b32.xlu1 %v1419_v32, %s1584_s15 }
0x188d   :  { %v1225_v33 = vpop.permute.xlu1 %1224 }
0x188e   :  { %v1227_v34 = vmul.f32 %v1574_v30, %v1225_v33 }
0x1890   :  { %1229 = vrot.lane.b32.xlu0 %v1227_v34, %s1583_s30 }
0x1902   :  { %v1230_v36 = vpop.permute.xlu0 %1229 }
0x1903   :  { %v1232_v8 = vadd.f32 %v1230_v36, %v1222_v35 }
0x1905   :  { %1575 = vtanh.f32 %v1232_v8 }
0x190f   :  { %v1576_v42 = vpop.eup %1575 }
0x1910   :  { %1235 = vrot.lane.b32.xlu1 %v1576_v42, %s1584_s15 }
0x1982   :  { %v1236_v44 = vpop.permute.xlu1 %1235 }
0x1983   :  { %v1238_v46 = vmul.f32 %v1574_v30, %v1236_v44 }
0x1985   :  { %1251 = vrot.lane.b32.xlu0 %v1238_v46, %s1583_s30 }
0x1989   :  { %1148 = vrot.lane.b32.xlu0 %v1102_v3, %s1585_s2 }
0x19f7   :  { %v1252_v47 = vpop.permute.xlu0 %1251 }
0x19f8   :  { %1422 = vst.msk [vmem:[%s2001_s8 + $0x8] sm:$0xff] %vm34_vm0, %v1252_v47  ;;  %1453 = vmatmul.mubr.msk.f32.vlgmr.msra.gmra.mrb[24].mxu0 %vm34_vm0, %v1252_v47 }
0x19fb   :  { %v1149_v0 = vpop.permute.xlu0 %1148 }
0x19fc   :  { %1151 = vst.msk [vmem:[#allocation3 + $0x8] sm:$0xff] %vm34_vm0, %v1149_v0  ;;  %1340 = vst.msk [vmem:[%s2003_s9] sm:$0xff] %vm34_vm0, %v1149_v0 }
0x1acb   :  { %v1321_v49 = vpop.f32.mrb[24].mxu0 }
0x1acc   :  { %v1322_v50 = vadd.f32 %v1420_v48, %v1321_v49  ;;  %v1454_v51 = vpop.f32.mrb[25].mxu0 }
0x1ace   :  { %v1326_v1 = vsel %vm1325_vm4, %v1322_v50, -inf }
0x1acf   :  { %1327 = vmax.xlane.f32.xlu1 %v1326_v1 }
0x1ae0   :  { %1153 = vrot.lane.b32.xlu1 %v1934_v17, %s1583_s30 }
0x1ae4   :  { %1158 = vrot.lane.b32.xlu1 %v1929_v13, %s1585_s2 }
0x1b5c   :  { %v1328_v45 = vpop.xlane.xlu1 %1327 }
0x1b5d   :  { %v1329_v57 = vsub.f32 %v1322_v50, %v1328_v45 }
0x1b5f   :  { %v1330_v52 = vmul.f32 1.442695, %v1329_v57 }
0x1b60   :  { %v1154_v53 = vpop.permute.xlu1 %1153 }
0x1b61   :  { %1577 = vpow2.f32 %v1330_v52  ;;  %1156 = vst.msk [vmem:[#allocation3 + $0x10] sm:$0xff] %vm34_vm0, %v1154_v53 }
0x1b64   :  { %v1159_v54 = vpop.permute.xlu1 %1158 }
0x1b65   :  { %1161 = vst.msk [vmem:[#allocation3 + $0x18] sm:$0xff] %vm34_vm0, %v1159_v54 }
0x1b6b   :  { %v1578_v55 = vpop.eup %1577 }
0x1b6c   :  { %v1332_v60 = vsel %vm1325_vm4, %v1578_v55, 0.0 }
0x1b6d   :  { %1333 = vadd.xlane.f32.xlu0 %v1332_v60 }
0x1b83   :  { %1345 = vrot.lane.b32.xlu0 %v1232_v8, %s1585_s2 }
0x1bfa   :  { %v1334_v27 = vpop.xlane.xlu0 %1333 }
0x1bfb   :  { %1579 = vlog2.f32 %v1334_v27 }
0x1bfe   :  { %v1346_v58 = vpop.permute.xlu0 %1345 }
0x1bff   :  { %1423 = vst.msk [vmem:[%s2003_s9 + $0x8] sm:$0xff] %vm34_vm0, %v1346_v58 }
0x1c05   :  { %v1580_v61 = vpop.eup %1579 }
0x1c06   :  { %v1336_v62 = vmul.f32 0.6931472, %v1580_v61 }
0x1c08   :  { %v1337_v63 = vsub.f32 %v1329_v57, %v1336_v62 }
0x1c0a   :  { %1338 = vst.msk [vmem:[%s2005_s7] sm:$0xff] %vm1325_vm4, %v1337_v63 }

</bundles_post_ra>
